<compile_context>
chip_gen: v6e
topology: v6e:2x2x1
jax: 0.10.0
libtpu: 0.0.40
codegen_flags: <defaults>
</compile_context>

<pallas_src>
import jax
import jax.numpy as jnp
import numpy as np
from jax import lax
from jax.experimental import pallas as pl
from jax.experimental.pallas import tpu as pltpu


def _round_up(v, m):
    return (v + m - 1) // m * m


def _make_cbr_kernel(hw_chunk, n_chunks):
    def cbr_kernel(x_ref, w_ref, b_ref, idx_ref, out_ref):
        # x_ref:   (TB, HWp, C)  bf16  input features, C on lanes
        # w_ref:   (C, Dp)       bf16  projection weight, pre-scaled by 1/HW
        # b_ref:   (1, Dp)       f32   projection bias
        # idx_ref: (K, Dp, NCp)  bf16  normalized index embeddings grouped by class
        # out_ref: (TB, NCp)     f32   per-class max cosine similarity
        tb = x_ref.shape[0]
        c = x_ref.shape[2]

        # Global average pool.  1/HW is folded into w, so this is a plain sum,
        # accumulated in f32 over hw_chunk-row slabs (never materializes a
        # full f32 copy of the bf16 x tile).
        def pool_body(j, acc):
            sl = x_ref[:, pl.ds(j * hw_chunk, hw_chunk), :].astype(jnp.float32)
            return acc + jnp.sum(sl, axis=1)

        pooled = lax.fori_loop(0, n_chunks, pool_body,
                               jnp.zeros((tb, c), jnp.float32),
                               unroll=bool(n_chunks <= 16))

        # Backbone projection on the MXU (bf16 operands, f32 accumulation).
        emb = jnp.dot(pooled.astype(jnp.bfloat16), w_ref[...],
                      preferred_element_type=jnp.float32) + b_ref[...]

        # L2 normalize: x / max(||x||, 1e-12) == x * rsqrt(max(sumsq, 1e-24)).
        sumsq = jnp.sum(emb * emb, axis=-1, keepdims=True)
        emb = emb * lax.rsqrt(jnp.maximum(sumsq, 1e-24))
        emb_bf = emb.astype(jnp.bfloat16)

        # Per-class max similarity = running max over K per-slot matmuls:
        # sims_k[b, cls] = <emb_b, idx[k, :, cls]>.  The class grouping (and
        # replicate-padding) is done at index-build time, so no mask, no
        # class-bias buffer and no (TB, NC, N) intermediate.
        k_slots = idx_ref.shape[0]

        def sim_body(k, running):
            s = jnp.dot(emb_bf, idx_ref[k], preferred_element_type=jnp.float32)
            return jnp.maximum(running, s)

        out_ref[...] = lax.fori_loop(
            0, k_slots, sim_body,
            jnp.full(out_ref.shape, -jnp.inf, jnp.float32),
            unroll=bool(k_slots <= 16))

    return cbr_kernel


def cbr_forward(x_nchw, w_proj, b_proj, index_embeddings, class_labels, num_classes):
    """Pure-JAX glue around the Pallas kernel.

    x_nchw:           (B, C, H, W) float32
    w_proj:           (C, D)       backbone projection weight
    b_proj:           (D,)         backbone projection bias
    index_embeddings: (N, D)       raw index embeddings (normalized here, like add_index_data)
    class_labels:     (N,) int32   class index per index sample
    """
    B, C, H, W = x_nchw.shape
    D = w_proj.shape[1]
    N = index_embeddings.shape[0]
    HW = H * W

    Dp = _round_up(D, 128)
    NCp = _round_up(num_classes, 128)

    # ---- index build (host side, mirrors add_index_data) -------------------
    idx = index_embeddings.astype(jnp.float32)
    idx = idx * lax.rsqrt(jnp.maximum(jnp.sum(idx * idx, axis=-1, keepdims=True), 1e-24))
    idx = jnp.pad(idx, ((0, 0), (0, Dp - D)))                       # (N, Dp)

    labels_np = np.asarray(class_labels).astype(np.int64)
    counts = np.bincount(labels_np, minlength=num_classes)
    K = max(int(counts.max()), 1)
    gather = np.zeros((num_classes, K), dtype=np.int32)
    has_samples = np.zeros((num_classes,), dtype=bool)
    for c_idx in range(num_classes):
        ids = np.nonzero(labels_np == c_idx)[0]
        if ids.size:
            has_samples[c_idx] = True
            gather[c_idx] = np.resize(ids, K)                       # replicate-pad (exact max)
    seg = idx[jnp.asarray(gather.reshape(-1))]                      # (NC*K, Dp)
    seg = seg.reshape(num_classes, K, Dp)
    seg = seg * jnp.asarray(has_samples, jnp.float32)[:, None, None]  # empty classes -> 0 vectors
    seg = jnp.pad(seg, ((0, NCp - num_classes), (0, 0), (0, 0)))    # (NCp, K, Dp)
    idx_kdc = jnp.transpose(seg, (1, 2, 0)).astype(jnp.bfloat16)    # (K, Dp, NCp)

    # ---- backbone projection params (1/HW folded into w) -------------------
    w = jnp.pad(w_proj.astype(jnp.float32) * (1.0 / HW),
                ((0, 0), (0, Dp - D))).astype(jnp.bfloat16)         # (C, Dp)
    b2d = jnp.pad(b_proj.astype(jnp.float32), (0, Dp - D)).reshape(1, Dp)

    # ---- x layout: (B, HW, C) bf16, HW padded to a multiple of the pool chunk
    hw_chunk = 64 if HW >= 64 else _round_up(HW, 8)
    HWp = _round_up(HW, hw_chunk)
    n_chunks = HWp // hw_chunk
    x_flat = jnp.transpose(x_nchw.reshape(B, C, HW), (0, 2, 1)).astype(jnp.bfloat16)
    if HWp > HW:
        x_flat = jnp.pad(x_flat, ((0, 0), (0, HWp - HW), (0, 0)))

    # ---- VMEM budget / batch tile, derived per TPU generation --------------
    try:
        vmem_cap = int(pltpu.get_tpu_info().vmem_capacity_bytes)
    except Exception:
        vmem_cap = 64 * 1024 * 1024            # conservative (v7x per-core VMEM)
    vmem_limit = max(32 << 20, min((vmem_cap * 5) // 8, 100 << 20))  # 40 MiB v7x, 80 MiB v5e/v6e

    resident = 2 * (w.size * 2 + b2d.size * 4 + idx_kdc.size * 2)   # double-buffered residents
    per_row = (2 * HWp * C * 2                 # double-buffered bf16 x tile
               + hw_chunk * C * 4              # live f32 pool slab
               + 2 * NCp * 4                   # double-buffered f32 output row
               + 4 * (C + 4 * Dp + 4 * NCp))   # pooled/emb/sims temporaries
    budget = vmem_limit - resident - (4 << 20)  # headroom for compiler scratch
    tb_max = budget // per_row
    if tb_max < 8:
        raise ValueError(
            f"CbR kernel: an 8-row x tile ({8 * per_row} B) does not fit the VMEM "
            f"budget ({budget} B); shrink H*W*C or the index, or raise vmem_limit.")

    tb = min(int(tb_max), 512)
    if tb >= 256:
        tb = (tb // 256) * 256                 # full 256x256 MXU passes (v6e/v7x)
    elif tb >= 128:
        tb = 128                               # full 128x128 MXU passes (v5e)
    else:
        tb = (tb // 8) * 8
    b_pad8 = _round_up(B, 8)
    tb = min(tb, b_pad8)
    if tb >= b_pad8 and b_pad8 >= 16:
        # >=2 grid steps so dual-TensorCore parts (v7x) can shard the batch axis.
        tb = _round_up((b_pad8 + 1) // 2, 8)
    Bp = _round_up(B, tb)
    if Bp > B:
        x_flat = jnp.pad(x_flat, ((0, Bp - B), (0, 0), (0, 0)))

    kernel = _make_cbr_kernel(hw_chunk, n_chunks)
    out = pl.pallas_call(
        kernel,
        out_shape=jax.ShapeDtypeStruct((Bp, NCp), jnp.float32),
        grid=(Bp // tb,),
        in_specs=[
            pl.BlockSpec((tb, HWp, C), lambda i: (i, 0, 0)),        # pipelined over batch
            pl.BlockSpec((C, Dp), lambda i: (0, 0)),                # resident
            pl.BlockSpec((1, Dp), lambda i: (0, 0)),                # resident
            pl.BlockSpec((K, Dp, NCp), lambda i: (0, 0, 0)),        # resident
        ],
        out_specs=pl.BlockSpec((tb, NCp), lambda i: (i, 0)),        # lane-dense store
        compiler_params=pltpu.CompilerParams(
            dimension_semantics=("parallel",),                      # shard batch across TCs
            vmem_limit_bytes=int(vmem_limit),
        ),
    )(x_flat, w, b2d, idx_kdc)

    logits = out[:B, :num_classes]
    # Classes with no index samples -> -inf (max over an empty mask), matching the reference.
    return jnp.where(jnp.asarray(has_samples)[None, :], logits, -jnp.inf)


def cbr_reference(x_nchw, w_proj, b_proj, index_embeddings, class_labels, num_classes):
    """Pure-JAX f32 reference mirroring the PyTorch forward() semantics."""
    B, C, H, W = x_nchw.shape
    pooled = jnp.mean(x_nchw.reshape(B, C, H * W), axis=-1)
    emb = pooled @ w_proj + b_proj
    emb = emb / jnp.maximum(jnp.linalg.norm(emb, axis=-1, keepdims=True), 1e-12)
    idx = index_embeddings / jnp.maximum(
        jnp.linalg.norm(index_embeddings, axis=-1, keepdims=True), 1e-12)
    sims = emb @ idx.T
    logits = []
    for c in range(num_classes):
        m = class_labels == c
        logits.append(jnp.max(jnp.where(m[None, :], sims, -jnp.inf), axis=-1))
    return jnp.stack(logits, axis=-1)


if __name__ == "__main__":
    # Small, deterministic shapes consistent with the module's forward().
    B, C, H, W = 2, 4, 16, 16       # input  (batch, channels, height, width)  NCHW
    D = 32                          # embedding_dim
    N = 8                           # number of index samples
    NUM_CLASSES = 4                 # labels cover 4 classes, 2 samples each

    key = jax.random.PRNGKey(0)
    k_x, k_w, k_b, k_idx = jax.random.split(key, 4)

    x = jax.random.normal(k_x, (B, C, H, W), dtype=jnp.float32)
    w_proj = jax.random.normal(k_w, (C, D), dtype=jnp.float32) * 0.1
    b_proj = jax.random.normal(k_b, (D,), dtype=jnp.float32) * 0.01
    index_embeddings = jax.random.normal(k_idx, (N, D), dtype=jnp.float32)
    class_labels = jnp.array([0, 0, 1, 1, 2, 2, 3, 3], dtype=jnp.int32)

    logits = cbr_forward(x, w_proj, b_proj, index_embeddings, class_labels, NUM_CLASSES)
    logits = jax.block_until_ready(logits)

    ref = cbr_reference(x, w_proj, b_proj, index_embeddings, class_labels, NUM_CLASSES)
    assert logits.shape == (B, NUM_CLASSES)
    # Tolerance loosened vs. the f32 reference: x and both matmul operands are
    # bf16 (cosine-similarity logits live in [-1, 1]).
    assert jnp.allclose(logits, ref, atol=3e-2, rtol=0.0), (logits, ref)

    print("KERNEL_OK")
</pallas_src>

<mosaic_0001>
module attributes {stable_mosaic.version = 11 : i64} {
  func.func @cbr_kernel(%arg0: i32, %arg1: memref<8x256x4xbf16, #tpu.memory_space<vmem>>, %arg2: memref<4x128xbf16, #tpu.memory_space<vmem>>, %arg3: memref<1x128xf32, #tpu.memory_space<vmem>>, %arg4: memref<2x128x128xbf16, #tpu.memory_space<vmem>>, %arg5: memref<8x128xf32, #tpu.memory_space<vmem>>) attributes {dimension_semantics = [#tpu.dimension_semantics<parallel>], iteration_bounds = array<i64: 1>, scalar_prefetch = 0 : i64, scratch_operands = 0 : i64, tpu.core_type = #tpu.core_type<tc>, window_params = [{transform_indices = @transform_0, window_bounds = array<i64: 8, 256, 4>}, {pipeline_mode = #tpu.pipeline_mode<synchronous>, transform_indices = @transform_1, window_bounds = array<i64: 4, 128>}, {pipeline_mode = #tpu.pipeline_mode<synchronous>, transform_indices = @transform_2, window_bounds = array<i64: 1, 128>}, {pipeline_mode = #tpu.pipeline_mode<synchronous>, transform_indices = @transform_3, window_bounds = array<i64: 2, 128, 128>}, {transform_indices = @transform_4, window_bounds = array<i64: 8, 128>}]} {
    %cst = arith.constant 0.000000e+00 : f32
    %0 = vector.broadcast %cst : f32 to vector<8x4xf32>
    %c0_i32 = arith.constant 0 : i32
    %c64_i32 = arith.constant 64 : i32
    %1 = arith.muli %c0_i32, %c64_i32 : i32
    %c0 = arith.constant 0 : index
    %2 = arith.index_cast %1 : i32 to index
    %c0_0 = arith.constant 0 : index
    %3 = vector.load %arg1[%c0, %2, %c0_0] : memref<8x256x4xbf16, #tpu.memory_space<vmem>>, vector<8x64x4xbf16>
    %4 = arith.extf %3 : vector<8x64x4xbf16> to vector<8x64x4xf32>
    %cst_1 = arith.constant dense<0.000000e+00> : vector<8x4xf32>
    %5 = vector.multi_reduction <add>, %4, %cst_1 [1] : vector<8x64x4xf32> to vector<8x4xf32>
    %6 = arith.addf %0, %5 : vector<8x4xf32>
    %c1_i32 = arith.constant 1 : i32
    %c64_i32_2 = arith.constant 64 : i32
    %7 = arith.muli %c1_i32, %c64_i32_2 : i32
    %c0_3 = arith.constant 0 : index
    %8 = arith.index_cast %7 : i32 to index
    %c0_4 = arith.constant 0 : index
    %9 = vector.load %arg1[%c0_3, %8, %c0_4] : memref<8x256x4xbf16, #tpu.memory_space<vmem>>, vector<8x64x4xbf16>
    %10 = arith.extf %9 : vector<8x64x4xbf16> to vector<8x64x4xf32>
    %cst_5 = arith.constant dense<0.000000e+00> : vector<8x4xf32>
    %11 = vector.multi_reduction <add>, %10, %cst_5 [1] : vector<8x64x4xf32> to vector<8x4xf32>
    %12 = arith.addf %6, %11 : vector<8x4xf32>
    %c2_i32 = arith.constant 2 : i32
    %c64_i32_6 = arith.constant 64 : i32
    %13 = arith.muli %c2_i32, %c64_i32_6 : i32
    %c0_7 = arith.constant 0 : index
    %14 = arith.index_cast %13 : i32 to index
    %c0_8 = arith.constant 0 : index
    %15 = vector.load %arg1[%c0_7, %14, %c0_8] : memref<8x256x4xbf16, #tpu.memory_space<vmem>>, vector<8x64x4xbf16>
    %16 = arith.extf %15 : vector<8x64x4xbf16> to vector<8x64x4xf32>
    %cst_9 = arith.constant dense<0.000000e+00> : vector<8x4xf32>
    %17 = vector.multi_reduction <add>, %16, %cst_9 [1] : vector<8x64x4xf32> to vector<8x4xf32>
    %18 = arith.addf %12, %17 : vector<8x4xf32>
    %c3_i32 = arith.constant 3 : i32
    %c64_i32_10 = arith.constant 64 : i32
    %19 = arith.muli %c3_i32, %c64_i32_10 : i32
    %c0_11 = arith.constant 0 : index
    %20 = arith.index_cast %19 : i32 to index
    %c0_12 = arith.constant 0 : index
    %21 = vector.load %arg1[%c0_11, %20, %c0_12] : memref<8x256x4xbf16, #tpu.memory_space<vmem>>, vector<8x64x4xbf16>
    %22 = arith.extf %21 : vector<8x64x4xbf16> to vector<8x64x4xf32>
    %cst_13 = arith.constant dense<0.000000e+00> : vector<8x4xf32>
    %23 = vector.multi_reduction <add>, %22, %cst_13 [1] : vector<8x64x4xf32> to vector<8x4xf32>
    %24 = arith.addf %18, %23 : vector<8x4xf32>
    %c4_i32 = arith.constant 4 : i32
    %25 = arith.truncf %24 : vector<8x4xf32> to vector<8x4xbf16>
    %c0_14 = arith.constant 0 : index
    %c0_15 = arith.constant 0 : index
    %26 = vector.load %arg2[%c0_14, %c0_15] : memref<4x128xbf16, #tpu.memory_space<vmem>>, vector<4x128xbf16>
    %cst_16 = arith.constant dense<0.000000e+00> : vector<8x128xf32>
    %27 = tpu.matmul %25, %26, %cst_16 {dimension_numbers = #tpu.dot_dimension_numbers<[1], [0], [0], [1], [0, 0, 1, 1], [], []>} : vector<8x4xbf16>, vector<4x128xbf16>, vector<8x128xf32> -> vector<8x128xf32>
    %c0_17 = arith.constant 0 : index
    %c0_18 = arith.constant 0 : index
    %28 = vector.load %arg3[%c0_17, %c0_18] : memref<1x128xf32, #tpu.memory_space<vmem>>, vector<1x128xf32>
    %29 = vector.broadcast %28 : vector<1x128xf32> to vector<8x128xf32>
    %30 = arith.addf %27, %29 : vector<8x128xf32>
    %31 = arith.mulf %30, %30 : vector<8x128xf32>
    %cst_19 = arith.constant dense<0.000000e+00> : vector<8xf32>
    %32 = vector.multi_reduction <add>, %31, %cst_19 [1] : vector<8x128xf32> to vector<8xf32>
    %33 = vector.shape_cast %32 : vector<8xf32> to vector<8x1xf32>
    %cst_20 = arith.constant 1.000000e-24 : f32
    %34 = vector.broadcast %cst_20 : f32 to vector<8x1xf32>
    %35 = arith.maximumf %33, %34 : vector<8x1xf32>
    %36 = math.rsqrt %35 : vector<8x1xf32>
    %37 = vector.broadcast %36 : vector<8x1xf32> to vector<8x128xf32>
    %38 = arith.mulf %30, %37 : vector<8x128xf32>
    %39 = arith.truncf %38 : vector<8x128xf32> to vector<8x128xbf16>
    %cst_21 = arith.constant 0xFF800000 : f32
    %40 = vector.broadcast %cst_21 : f32 to vector<8x128xf32>
    %c0_i32_22 = arith.constant 0 : i32
    %41 = arith.index_cast %c0_i32_22 : i32 to index
    %c0_23 = arith.constant 0 : index
    %c0_24 = arith.constant 0 : index
    %42 = vector.load %arg4[%41, %c0_23, %c0_24] : memref<2x128x128xbf16, #tpu.memory_space<vmem>>, vector<1x128x128xbf16>
    %43 = vector.shape_cast %42 : vector<1x128x128xbf16> to vector<128x128xbf16>
    %cst_25 = arith.constant dense<0.000000e+00> : vector<8x128xf32>
    %44 = tpu.matmul %39, %43, %cst_25 {dimension_numbers = #tpu.dot_dimension_numbers<[1], [0], [0], [1], [0, 0, 1, 1], [], []>} : vector<8x128xbf16>, vector<128x128xbf16>, vector<8x128xf32> -> vector<8x128xf32>
    %45 = arith.maximumf %40, %44 : vector<8x128xf32>
    %c1_i32_26 = arith.constant 1 : i32
    %46 = arith.index_cast %c1_i32_26 : i32 to index
    %c0_27 = arith.constant 0 : index
    %c0_28 = arith.constant 0 : index
    %47 = vector.load %arg4[%46, %c0_27, %c0_28] : memref<2x128x128xbf16, #tpu.memory_space<vmem>>, vector<1x128x128xbf16>
    %48 = vector.shape_cast %47 : vector<1x128x128xbf16> to vector<128x128xbf16>
    %cst_29 = arith.constant dense<0.000000e+00> : vector<8x128xf32>
    %49 = tpu.matmul %39, %48, %cst_29 {dimension_numbers = #tpu.dot_dimension_numbers<[1], [0], [0], [1], [0, 0, 1, 1], [], []>} : vector<8x128xbf16>, vector<128x128xbf16>, vector<8x128xf32> -> vector<8x128xf32>
    %50 = arith.maximumf %45, %49 : vector<8x128xf32>
    %c2_i32_30 = arith.constant 2 : i32
    %c0_31 = arith.constant 0 : index
    %c0_32 = arith.constant 0 : index
    %51 = vector.load %arg5[%c0_31, %c0_32] : memref<8x128xf32, #tpu.memory_space<vmem>>, vector<8x128xf32>
    tpu.vector_store %arg5[%c0_31, %c0_32], %50 {strides = array<i32>} : memref<8x128xf32, #tpu.memory_space<vmem>>, vector<8x128xf32>,
    return
  }
  func.func @transform_0(%arg0: i32) -> (i32, i32, i32) {
    %c0_i32 = arith.constant 0 : i32
    %c0_i32_0 = arith.constant 0 : i32
    %c0_i32_1 = arith.constant 0 : i32
    return %arg0, %c0_i32, %c0_i32_0 : i32, i32, i32
  }
  func.func @transform_1(%arg0: i32) -> (i32, i32) {
    %c0_i32 = arith.constant 0 : i32
    %c0_i32_0 = arith.constant 0 : i32
    %c0_i32_1 = arith.constant 0 : i32
    return %c0_i32, %c0_i32_0 : i32, i32
  }
  func.func @transform_2(%arg0: i32) -> (i32, i32) {
    %c0_i32 = arith.constant 0 : i32
    %c0_i32_0 = arith.constant 0 : i32
    %c0_i32_1 = arith.constant 0 : i32
    return %c0_i32, %c0_i32_0 : i32, i32
  }
  func.func @transform_3(%arg0: i32) -> (i32, i32, i32) {
    %c0_i32 = arith.constant 0 : i32
    %c0_i32_0 = arith.constant 0 : i32
    %c0_i32_1 = arith.constant 0 : i32
    %c0_i32_2 = arith.constant 0 : i32
    return %c0_i32, %c0_i32_0, %c0_i32_1 : i32, i32, i32
  }
  func.func @transform_4(%arg0: i32) -> (i32, i32) {
    %c0_i32 = arith.constant 0 : i32
    %c0_i32_0 = arith.constant 0 : i32
    return %arg0, %c0_i32 : i32, i32
  }
}

</mosaic_0001>

<bundles_post_ra>
// kernel: tpu_custom_call.1
= control target key start
LH: loop header
LB: loop body
LE: loop exit
PB: predicated region body
PF: predicated region fallthrough
CT: control target
= control target key end

     0   :  { %vm1286_vm0 = vcmask 1041408   ;;  %v4165_v1 = vmov 0.0   ;;  %vm2345_vm1 = vmmov 0   ;;  %vm147_vm2 = vcmask 31744   ;;  %s4160_s0 = inlined_call_operand.vmem [shape: bf16[8,256,4], index: 0, kind: input, shape index: {}]   ;;  %s4161_s1 = inlined_call_operand.vmem [shape: bf16[4,128], index: 1, kind: input, shape index: {}]   ;;  %s4162_s2 = inlined_call_operand.vmem [shape: f32[1,128], index: 2, kind: input, shape index: {}]   ;;  %s4163_s3 = inlined_call_operand.vmem [shape: bf16[2,128,128], index: 3, kind: input, shape index: {}]   ;;  %s4164_s4 = inlined_call_operand.hbm [shape: f32[8,128], index: 4, kind: output, shape index: {}]  }
   0x1   :  { %v1244_v0 = vld [vmem:[%s4161_s1] sm:$0x3]  ;;  %2255 = vmatprep.subr.bf16.mxu0 %v4165_v1  ;;  %2257 = vmatprep.mubr.msk.bf16.mxu0 %vm2345_vm1, %v4165_v1  ;;  %v2386_v4 = vld [vmem:[%s4160_s0 + $0x8] sm:$0xff]   ;;  %v2391_v5 = vld [vmem:[%s4160_s0 + $0x10] sm:$0xff]  }
   0x2   :  { %v1288_v2 = vsel %vm1286_vm0, %v1244_v0, 0  ;;  %v2381_v3 = vld [vmem:[%s4160_s0] sm:$0xff]   ;;  %2261 = vmatprep.subr.bf16.mxu1 %v4165_v1  ;;  %v2397_v6 = vld [vmem:[%s4160_s0 + $0x18] sm:$0xff]   ;;  %2277 = vmatprep.mubr.msk.bf16.mxu1 %vm2345_vm1, %v4165_v1  ;;  %v2411_v9 = vld [vmem:[%s4160_s0 + $0x88] sm:$0xff]   ;;  %v1602_v12 = vunpack.c.l.bf16 %v2386_v4  ;;  %v1603_v13 = vunpack.c.h.bf16 %v2386_v4  ;;  %v1606_v14 = vunpack.c.l.bf16 %v2391_v5 }
   0x3   :  { %2256 = vmatpush3.bf16.msra.mxu0 %v1288_v2  ;;  %v2402_v7 = vld [vmem:[%s4160_s0 + $0x80] sm:$0xff]   ;;  %v1598_v8 = vunpack.c.l.bf16 %v2381_v3  ;;  %v2416_v10 = vld [vmem:[%s4160_s0 + $0x90] sm:$0xff]   ;;  %v1599_v11 = vunpack.c.h.bf16 %v2381_v3  ;;  %v2425_v15 = vld [vmem:[%s4160_s0 + $0x98] sm:$0xff]   ;;  %v1607_v17 = vunpack.c.h.bf16 %v2391_v5  ;;  %v1610_v18 = vunpack.c.l.bf16 %v2397_v6 }
   0x4   :  { %2281 = vmatprep.subr.bf16.mxu0 %v4165_v1  ;;  %v2430_v16 = vld [vmem:[%s4160_s0 + $0x100] sm:$0xff]   ;;  %v1611_v19 = vunpack.c.h.bf16 %v2397_v6  ;;  %v1614_v20 = vunpack.c.l.bf16 %v2402_v7  ;;  %v2439_v21 = vld [vmem:[%s4160_s0 + $0x108] sm:$0xff]   ;;  %v2444_v22 = vld [vmem:[%s4160_s0 + $0x110] sm:$0xff]   ;;  %v1615_v23 = vunpack.c.h.bf16 %v2402_v7  ;;  %v1618_v24 = vunpack.c.l.bf16 %v2411_v9 }
   0x5   :  { %v1619_v25 = vunpack.c.h.bf16 %v2411_v9  ;;  %v1622_v26 = vunpack.c.l.bf16 %v2416_v10  ;;  %v2453_v27 = vld [vmem:[%s4160_s0 + $0x118] sm:$0xff]   ;;  %v2458_v28 = vld [vmem:[%s4160_s0 + $0x180] sm:$0xff]   ;;  %v1623_v29 = vunpack.c.h.bf16 %v2416_v10  ;;  %v1626_v30 = vunpack.c.l.bf16 %v2425_v15  ;;  %v2467_v33 = vld [vmem:[%s4160_s0 + $0x188] sm:$0xff]  }
   0x6   :  { %v1627_v31 = vunpack.c.h.bf16 %v2425_v15  ;;  %v1630_v32 = vunpack.c.l.bf16 %v2430_v16  ;;  %v2472_v34 = vld [vmem:[%s4160_s0 + $0x190] sm:$0xff]   ;;  %v1631_v35 = vunpack.c.h.bf16 %v2430_v16  ;;  %v1634_v36 = vunpack.c.l.bf16 %v2439_v21  ;;  %v2481_v39 = vld [vmem:[%s4160_s0 + $0x198] sm:$0xff]   ;;  %v2486_v40 = vld [vmem:[%s4160_s0 + $0x200] sm:$0xff]  }
   0x7   :  { %v1635_v37 = vunpack.c.h.bf16 %v2439_v21  ;;  %v1638_v38 = vunpack.c.l.bf16 %v2444_v22  ;;  %v1639_v41 = vunpack.c.h.bf16 %v2444_v22  ;;  %v1642_v42 = vunpack.c.l.bf16 %v2453_v27  ;;  %v2495_v45 = vld [vmem:[%s4160_s0 + $0x208] sm:$0xff]   ;;  %v2500_v46 = vld [vmem:[%s4160_s0 + $0x210] sm:$0xff]   ;;  %v2509_v51 = vld [vmem:[%s4160_s0 + $0x218] sm:$0xff]  }
   0x8   :  { %v1643_v43 = vunpack.c.h.bf16 %v2453_v27  ;;  %v1646_v44 = vunpack.c.l.bf16 %v2458_v28  ;;  %v1647_v47 = vunpack.c.h.bf16 %v2458_v28  ;;  %v1650_v48 = vunpack.c.l.bf16 %v2467_v33  ;;  %v2514_v52 = vld [vmem:[%s4160_s0 + $0x280] sm:$0xff]   ;;  %v2523_v57 = vld [vmem:[%s4160_s0 + $0x288] sm:$0xff]   ;;  %v2528_v58 = vld [vmem:[%s4160_s0 + $0x290] sm:$0xff]  }
   0x9   :  { %v1651_v49 = vunpack.c.h.bf16 %v2467_v33  ;;  %v2537_v63 = vld [vmem:[%s4160_s0 + $0x298] sm:$0xff]   ;;  %v2542_v0 = vld [vmem:[%s4160_s0 + $0x300] sm:$0xff]   ;;  %v2551_v62 = vld [vmem:[%s4160_s0 + $0x308] sm:$0xff]   ;;  %v148_v54 = vsel %vm147_vm2, %v1598_v8, 0.0  ;;  %v149_v2 = vsel %vm147_vm2, %v1599_v11, 0.0  ;;  %v151_v56 = vsel %vm147_vm2, %v1602_v12, 0.0 }
   0xa   :  { %v2560_v1 = vld [vmem:[%s4160_s0 + $0x310] sm:$0xff]   ;;  %v2569_v53 = vld [vmem:[%s4160_s0 + $0x318] sm:$0xff]   ;;  %v1699_v61 = vunpack.c.h.bf16 %v2551_v62  ;;  %v150_v55 = vadd.f32 %v149_v2, %v148_v54  ;;  %v153_v8 = vsel %vm147_vm2, %v1603_v13, 0.0  ;;  %v169_v3 = vsel %vm147_vm2, %v1614_v20, 0.0 }
   0xb   :  { %v1702_v50 = vunpack.c.l.bf16 %v2560_v1  ;;  %v1703_v59 = vunpack.c.h.bf16 %v2560_v1  ;;  %v1706_v60 = vunpack.c.l.bf16 %v2569_v53  ;;  %v155_v54 = vsel %vm147_vm2, %v1606_v14, 0.0 }
   0xc   :  { %v152_v11 = vadd.f32 %v151_v56, %v150_v55  ;;  %v170_v12 = vsel %vm147_vm2, %v1615_v23, 0.0  ;;  %v172_v2 = vsel %vm147_vm2, %v1618_v24, 0.0  ;;  %v157_v4 = vsel %vm147_vm2, %v1607_v17, 0.0 }
   0xd   :  { %v159_v13 = vsel %vm147_vm2, %v1610_v18, 0.0  ;;  %v161_v14 = vsel %vm147_vm2, %v1611_v19, 0.0  ;;  %v171_v20 = vadd.f32 %v170_v12, %v169_v3  ;;  %v174_v23 = vsel %vm147_vm2, %v1619_v25, 0.0 }
   0xe   :  { %v154_v7 = vadd.f32 %v153_v8, %v152_v11  ;;  %v190_v5 = vsel %vm147_vm2, %v1630_v32, 0.0  ;;  %v191_v17 = vsel %vm147_vm2, %v1631_v35, 0.0  ;;  %v176_v6 = vsel %vm147_vm2, %v1622_v26, 0.0 }
   0xf   :  { %v173_v24 = vadd.f32 %v172_v2, %v171_v20  ;;  %v192_v18 = vadd.f32 %v191_v17, %v190_v5  ;;  %v193_v9 = vsel %vm147_vm2, %v1634_v36, 0.0  ;;  %v178_v25 = vsel %vm147_vm2, %v1623_v29, 0.0 }
  0x10   :  { %v156_v19 = vadd.f32 %v155_v54, %v154_v7  ;;  %v180_v16 = vsel %vm147_vm2, %v1626_v30, 0.0  ;;  %v195_v32 = vsel %vm147_vm2, %v1635_v37, 0.0  ;;  %v182_v26 = vsel %vm147_vm2, %v1627_v31, 0.0 }
  0x11   :  { %v175_v35 = vadd.f32 %v174_v23, %v173_v24  ;;  %v194_v55 = vadd.f32 %v193_v9, %v192_v18  ;;  %v211_v10 = vsel %vm147_vm2, %v1646_v44, 0.0  ;;  %v197_v29 = vsel %vm147_vm2, %v1638_v38, 0.0 }
  0x12   :  { %v158_v36 = vadd.f32 %v157_v4, %v156_v19  ;;  %v212_v21 = vsel %vm147_vm2, %v1647_v47, 0.0  ;;  %v214_v15 = vsel %vm147_vm2, %v1650_v48, 0.0  ;;  %v199_v37 = vsel %vm147_vm2, %v1639_v41, 0.0 }
  0x13   :  { %v177_v30 = vadd.f32 %v176_v6, %v175_v35  ;;  %v196_v31 = vadd.f32 %v195_v32, %v194_v55  ;;  %v213_v44 = vadd.f32 %v212_v21, %v211_v10  ;;  %v201_v38 = vsel %vm147_vm2, %v1642_v42, 0.0 }
  0x14   :  { %v160_v56 = vadd.f32 %v159_v13, %v158_v36  ;;  %v203_v28 = vsel %vm147_vm2, %v1643_v43, 0.0  ;;  %v216_v47 = vsel %vm147_vm2, %v1651_v49, 0.0  ;;  %v4167_v22 = vunpack.c.l.bf16 %v2486_v40 }
  0x15   :  { %v179_v48 = vadd.f32 %v178_v25, %v177_v30  ;;  %v198_v8 = vadd.f32 %v197_v29, %v196_v31  ;;  %v215_v3 = vadd.f32 %v214_v15, %v213_v44  ;;  %v4168_v54 = vunpack.c.l.bf16 %v2472_v34 }
  0x16   :  { %v232_v41 = vsel %vm147_vm2, %v4167_v22, 0.0  ;;  %v162_v11 = vadd.f32 %v161_v14, %v160_v56  ;;  %v4169_v27 = vunpack.c.h.bf16 %v2486_v40  ;;  %v4170_v33 = vunpack.c.l.bf16 %v2495_v45 }
  0x17   :  { %v218_v42 = vsel %vm147_vm2, %v4168_v54, 0.0  ;;  %v181_v12 = vadd.f32 %v180_v16, %v179_v48  ;;  %v200_v2 = vadd.f32 %v199_v37, %v198_v8  ;;  %v217_v4 = vadd.f32 %v216_v47, %v215_v3 }
  0x18   :  { %v233_v43 = vsel %vm147_vm2, %v4169_v27, 0.0  ;;  %v235_v49 = vsel %vm147_vm2, %v4170_v33, 0.0  ;;  %v163_v20 = vrot.slane %v162_v11, 4  ;;  %v4171_v7 = vunpack.c.h.bf16 %v2472_v34 }
  0x19   :  { %v234_v13 = vadd.f32 %v233_v43, %v232_v41  ;;  %v4172_v23 = vunpack.c.l.bf16 %v2481_v39  ;;  %v4173_v40 = vunpack.c.h.bf16 %v2495_v45  ;;  %v183_v24 = vadd.f32 %v182_v26, %v181_v12  ;;  %v2697_v26 = vld [vmem:[%s4160_s0 + $0x380] sm:$0xff]   ;;  %v2136_v41 = vld [vmem:[%s4160_s0 + $0x388] sm:$0xff]  }
  0x1a   :  { %v220_v14 = vsel %vm147_vm2, %v4171_v7, 0.0  ;;  %v202_v6 = vadd.f32 %v201_v38, %v200_v2  ;;  %v219_v18 = vadd.f32 %v218_v42, %v217_v4  ;;  %v4174_v19 = vunpack.c.h.bf16 %v2481_v39 }
  0x1b   :  { %v222_v5 = vsel %vm147_vm2, %v4172_v23, 0.0  ;;  %v237_v17 = vsel %vm147_vm2, %v4173_v40, 0.0  ;;  %v236_v9 = vadd.f32 %v235_v49, %v234_v13  ;;  %v4175_v34 = vunpack.c.l.bf16 %v2500_v46  ;;  %v2137_v13 = vld [vmem:[%s4160_s0 + $0x390] sm:$0xff]  }
  0x1c   :  { %v224_v25 = vsel %vm147_vm2, %v4174_v19, 0.0  ;;  %v4176_v32 = vunpack.c.l.bf16 %v2514_v52  ;;  %v4177_v45 = vunpack.c.h.bf16 %v2514_v52  ;;  %v184_v39 = vrot.slane %v183_v24, 4 }
  0x1d   :  { %v239_v16 = vsel %vm147_vm2, %v4175_v34, 0.0  ;;  %v204_v10 = vadd.f32 %v203_v28, %v202_v6  ;;  %v221_v36 = vadd.f32 %v220_v14, %v219_v18  ;;  %v238_v29 = vadd.f32 %v237_v17, %v236_v9 }
  0x1e   :  { %v253_v35 = vsel %vm147_vm2, %v4176_v32, 0.0  ;;  %v254_v55 = vsel %vm147_vm2, %v4177_v45, 0.0  ;;  %v164_v21 = vadd.f32 %v163_v20, %v162_v11  ;;  %v4178_v15 = vunpack.c.h.bf16 %v2500_v46 }
  0x1f   :  { %v255_v31 = vadd.f32 %v254_v55, %v253_v35  ;;  %v4179_v37 = vunpack.c.l.bf16 %v2523_v57  ;;  %v205_v44 = vrot.slane %v204_v10, 4  ;;  %v223_v56 = vadd.f32 %v222_v5, %v221_v36 }
  0x20   :  { %v241_v30 = vsel %vm147_vm2, %v4178_v15, 0.0  ;;  %v240_v38 = vadd.f32 %v239_v16, %v238_v29  ;;  %v4180_v47 = vunpack.c.h.bf16 %v2523_v57  ;;  %v1707_v28 = vunpack.c.h.bf16 %v2569_v53 }
  0x21   :  { %v256_v52 = vsel %vm147_vm2, %v4179_v37, 0.0  ;;  %v1710_v8 = vunpack.c.l.bf16 %v2697_v26  ;;  %v4181_v46 = vunpack.c.l.bf16 %v2509_v51  ;;  %v185_v11 = vadd.f32 %v184_v39, %v183_v24 }
  0x22   :  { %v258_v48 = vsel %vm147_vm2, %v4180_v47, 0.0  ;;  %v257_v22 = vadd.f32 %v256_v52, %v255_v31  ;;  %v225_v54 = vadd.f32 %v224_v25, %v223_v56  ;;  %v242_v42 = vadd.f32 %v241_v30, %v240_v38 }
  0x23   :  { %v243_v3 = vsel %vm147_vm2, %v4181_v46, 0.0  ;;  %v4182_v57 = vunpack.c.l.bf16 %v2528_v58  ;;  %v165_v43 = vrot.slane %v164_v21, 2  ;;  %v206_v33 = vadd.f32 %v205_v44, %v204_v10 }
  0x24   :  { %v4183_v49 = vunpack.c.h.bf16 %v2509_v51  ;;  %v259_v2 = vadd.f32 %v258_v48, %v257_v22  ;;  %v1711_v4 = vunpack.c.h.bf16 %v2697_v26  ;;  %v226_v20 = vrot.slane %v225_v54, 4 }
  0x25   :  { %v260_v27 = vsel %vm147_vm2, %v4182_v57, 0.0  ;;  %v244_v7 = vadd.f32 %v243_v3, %v242_v42  ;;  %v4184_v14 = vunpack.c.h.bf16 %v2528_v58  ;;  %v1714_v5 = vunpack.c.l.bf16 %v2136_v41 }
  0x26   :  { %v245_v12 = vsel %vm147_vm2, %v4183_v49, 0.0  ;;  %v261_v40 = vadd.f32 %v260_v27, %v259_v2  ;;  %v4185_v17 = vunpack.c.l.bf16 %v2542_v0  ;;  %v4186_v24 = vunpack.c.h.bf16 %v2542_v0 }
  0x27   :  { %v262_v23 = vsel %vm147_vm2, %v4184_v14, 0.0  ;;  %v186_v18 = vrot.slane %v185_v11, 2  ;;  %v227_v9 = vadd.f32 %v226_v20, %v225_v54  ;;  %v246_v19 = vadd.f32 %v245_v12, %v244_v7 }
  0x28   :  { %v274_v51 = vsel %vm147_vm2, %v4185_v17, 0.0  ;;  %v275_v6 = vsel %vm147_vm2, %v4186_v24, 0.0  ;;  %v4187_v25 = vunpack.c.l.bf16 %v2537_v63  ;;  %v207_v58 = vrot.slane %v206_v33, 2 }
  0x29   :  { %v263_v16 = vadd.f32 %v262_v23, %v261_v40  ;;  %v276_v32 = vadd.f32 %v275_v6, %v274_v51  ;;  %v4188_v35 = vunpack.c.l.bf16 %v2551_v62  ;;  %v228_v55 = vrot.slane %v227_v9, 2 }
  0x2a   :  { %v264_v34 = vsel %vm147_vm2, %v4187_v25, 0.0  ;;  %v247_v26 = vrot.slane %v246_v19, 4  ;;  %v4189_v0 = vunpack.c.h.bf16 %v2537_v63  ;;  %v279_v10 = vsel %vm147_vm2, %v1699_v61, 0.0  ;;  %v2138_v61 = vld [vmem:[%s4160_s0 + $0x398] sm:$0xff]  }
  0x2b   :  { %v277_v45 = vsel %vm147_vm2, %v4188_v35, 0.0  ;;  %v1715_v36 = vunpack.c.h.bf16 %v2136_v41  ;;  %v1718_v29 = vunpack.c.l.bf16 %v2137_v13  ;;  %v265_v15 = vadd.f32 %v264_v34, %v263_v16 }
  0x2c   :  { %v266_v39 = vsel %vm147_vm2, %v4189_v0, 0.0  ;;  %v278_v30 = vadd.f32 %v277_v45, %v276_v32  ;;  %v166_v31 = vadd.f32 %v165_v43, %v164_v21  ;;  %v187_v37 = vadd.f32 %v186_v18, %v185_v11 }
  0x2d   :  { %v248_v52 = vadd.f32 %v247_v26, %v246_v19  ;;  %v281_v44 = vsel %vm147_vm2, %v1702_v50, 0.0  ;;  %v208_v56 = vadd.f32 %v207_v58, %v206_v33  ;;  %v267_v38 = vadd.f32 %v266_v39, %v265_v15 }
  0x2e   :  { %v280_v63 = vadd.f32 %v279_v10, %v278_v30  ;;  %v295_v47 = vsel %vm147_vm2, %v1710_v8, 0.0  ;;  %v229_v62 = vadd.f32 %v228_v55, %v227_v9  ;;  %v283_v21 = vsel %vm147_vm2, %v1703_v59, 0.0 }
  0x2f   :  { %v296_v48 = vsel %vm147_vm2, %v1711_v4, 0.0  ;;  %v298_v46 = vsel %vm147_vm2, %v1714_v5, 0.0  ;;  %v268_v3 = vrot.slane %v267_v38, 4  ;;  %v285_v22 = vsel %vm147_vm2, %v1706_v60, 0.0 }
  0x30   :  { %v282_v50 = vadd.f32 %v281_v44, %v280_v63  ;;  %v297_v8 = vadd.f32 %v296_v48, %v295_v47  ;;  %v1719_v41 = vunpack.c.h.bf16 %v2137_v13  ;;  %v249_v11 = vrot.slane %v248_v52, 2 }
  0x31   :  { %v300_v54 = vsel %vm147_vm2, %v1715_v36, 0.0  ;;  %v1722_v42 = vunpack.c.l.bf16 %v2138_v61  ;;  %v269_v57 = vadd.f32 %v268_v3, %v267_v38  ;;  %v167_v59 = vrot.slane %v166_v31, 1 }
  0x32   :  { %v284_v1 = vadd.f32 %v283_v21, %v282_v50  ;;  %v299_v27 = vadd.f32 %v298_v46, %v297_v8  ;;  %v188_v43 = vrot.slane %v187_v37, 1  ;;  %v287_v33 = vsel %vm147_vm2, %v1707_v28, 0.0 }
  0x33   :  { %v302_v49 = vsel %vm147_vm2, %v1718_v29, 0.0  ;;  %v209_v12 = vrot.slane %v208_v56, 1  ;;  %v230_v2 = vrot.slane %v229_v62, 1  ;;  %v1723_v13 = vunpack.c.h.bf16 %v2138_v61 }
  0x34   :  { %v286_v60 = vadd.f32 %v285_v22, %v284_v1  ;;  %v301_v4 = vadd.f32 %v300_v54, %v299_v27  ;;  %v2767_v20 = vadd.f32 %v249_v11, %v248_v52  ;;  %v270_v7 = vrot.slane %v269_v57, 2 }
  0x35   :  { %v304_v14 = vsel %vm147_vm2, %v1719_v41, 0.0 }
  0x36   :  { %9 = vsyncpa [#allocation3], 0  ;;  %v288_v23 = vadd.f32 %v287_v33, %v286_v60  ;;  %v303_v5 = vadd.f32 %v302_v49, %v301_v4  ;;  %v2773_v53 = vld [vmem:[%s4160_s0 + $0x20] sm:$0xff]   ;;  %v2775_v28 = vadd.f32 %v167_v59, %v166_v31  ;;  %v2777_v40 = vadd.f32 %v188_v43, %v187_v37  ;;  %v2783_v51 = vld [vmem:[%s4160_s0 + $0x28] sm:$0xff]   ;;  %s2346_s7 = smov [#allocation2]  }
  0x37   :  { %v306_v17 = vsel %vm147_vm2, %v1722_v42, 0.0  ;;  %v2785_v24 = vadd.f32 %v209_v12, %v208_v56  ;;  %v2787_v6 = vadd.f32 %v230_v2, %v229_v62  ;;  %v2792_v19 = vld [vmem:[%s4160_s0 + $0x30] sm:$0xff]   ;;  %v2797_v25 = vld [vmem:[%s4160_s0 + $0x38] sm:$0xff]   ;;  %v2800_v58 = vadd.f32 %v270_v7, %v269_v57  ;;  %v2807_v35 = vld [vmem:[%s4160_s0 + $0xa0] sm:$0xff]   ;;  %s1554_s8 = sshll.u32 %s2346_s7, 4  ;;  %s1555_s8 = int_to_ptr.vmem [resolvable:$true] %s1554_s8 }
  0x38   :  { %v289_v18 = vrot.slane %v288_v23, 4  ;;  %v305_v9 = vadd.f32 %v304_v14, %v303_v5  ;;  %v308_v16 = vsel %vm147_vm2, %v1723_v13, 0.0  ;;  %v1726_v32 = vunpack.c.l.bf16 %v2773_v53  ;;  %v2814_v39 = vld [vmem:[%s4160_s0 + $0xa8] sm:$0xff]   ;;  %v2823_v30 = vld [vmem:[%s4160_s0 + $0xb0] sm:$0xff]   ;;  %v2828_v31 = vld [vmem:[%s4160_s0 + $0xb8] sm:$0xff]   ;;  %p2327_p1 = scmp.lt.s32.totalorder %s1555_s8, %s1555_s8 }
  0x39   :  { %v1727_v26 = vunpack.c.h.bf16 %v2773_v53  ;;  %v1730_v0 = vunpack.c.l.bf16 %v2783_v51  ;;  %v1731_v10 = vunpack.c.h.bf16 %v2783_v51  ;;  %v1734_v36 = vunpack.c.l.bf16 %v2792_v19  ;;  %v2835_v38 = vld [vmem:[%s4160_s0 + $0x120] sm:$0xff]   ;;  %v2840_v63 = vld [vmem:[%s4160_s0 + $0x128] sm:$0xff]   ;;  %v2849_v48 = vld [vmem:[%s4160_s0 + $0x130] sm:$0xff]  }
  0x3a   :  { %v290_v45 = vadd.f32 %v289_v18, %v288_v23  ;;  %v307_v55 = vadd.f32 %v306_v17, %v305_v9  ;;  %v1735_v29 = vunpack.c.h.bf16 %v2792_v19  ;;  %v1738_v15 = vunpack.c.l.bf16 %v2797_v25  ;;  %v2857_v8 = vld [vmem:[%s4160_s0 + $0x138] sm:$0xff]   ;;  %v2862_v41 = vld [vmem:[%s4160_s0 + $0x1a0] sm:$0xff]   ;;  %v2871_v1 = vld [vmem:[%s4160_s0 + $0x1a8] sm:$0xff]  }
  0x3b   :  { %v1739_v44 = vunpack.c.h.bf16 %v2797_v25  ;;  %v1742_v56 = vunpack.c.l.bf16 %v2807_v35  ;;  %v1743_v61 = vunpack.c.h.bf16 %v2807_v35  ;;  %v1746_v62 = vunpack.c.l.bf16 %v2814_v39  ;;  %v2876_v27 = vld [vmem:[%s4160_s0 + $0x1b0] sm:$0xff]   ;;  %v2886_v12 = vld [vmem:[%s4160_s0 + $0x1b8] sm:$0xff]   ;;  %v2891_v2 = vld [vmem:[%s4160_s0 + $0x220] sm:$0xff]  }
  0x3c   :  { %v291_v37 = vrot.slane %v290_v45, 2  ;;  %v309_v52 = vadd.f32 %v308_v16, %v307_v55  ;;  %v1747_v21 = vunpack.c.h.bf16 %v2814_v39  ;;  %v1750_v3 = vunpack.c.l.bf16 %v2823_v30  ;;  %v2901_v14 = vld [vmem:[%s4160_s0 + $0x228] sm:$0xff]   ;;  %v2910_v9 = vld [vmem:[%s4160_s0 + $0x230] sm:$0xff]   ;;  %v2915_v16 = vld [vmem:[%s4160_s0 + $0x238] sm:$0xff]  }
  0x3d   :  { %v1751_v50 = vunpack.c.h.bf16 %v2823_v30  ;;  %v1754_v22 = vunpack.c.l.bf16 %v2828_v31  ;;  %v1758_v54 = vunpack.c.l.bf16 %v2835_v38  ;;  %v1759_v42 = vunpack.c.h.bf16 %v2835_v38  ;;  %v2929_v47 = vld [vmem:[%s4160_s0 + $0x2a8] sm:$0xff]   ;;  %v2938_v18 = vld [vmem:[%s4160_s0 + $0x2b0] sm:$0xff]   ;;  %v2975_v4 = vld [vmem:[%s4160_s0 + $0x338] sm:$0xff]  }
  0x3e   :  { %v310_v46 = vrot.slane %v309_v52, 4  ;;  %v1762_v57 = vunpack.c.l.bf16 %v2840_v63  ;;  %v2878_v59 = vadd.f32 %v291_v37, %v290_v45  ;;  %v1763_v43 = vunpack.c.h.bf16 %v2840_v63  ;;  %v2952_v37 = vld [vmem:[%s4160_s0 + $0x320] sm:$0xff]   ;;  %v2957_v13 = vld [vmem:[%s4160_s0 + $0x328] sm:$0xff]   ;;  %v2966_v55 = vld [vmem:[%s4160_s0 + $0x330] sm:$0xff]  }
  0x3f   :  { %v2984_v5 = vld [vmem:[%s4160_s0 + $0x3a0] sm:$0xff]   ;;  %v452_v49 = vsel %vm147_vm2, %v1726_v32, 0.0  ;;  %v453_v45 = vsel %vm147_vm2, %v1727_v26, 0.0  ;;  %v1831_v17 = vunpack.c.h.bf16 %v2966_v55  ;;  %v1834_v7 = vunpack.c.l.bf16 %v2975_v4 }
  0x40   :  { %v2893_v60 = vadd.f32 %v310_v46, %v309_v52  ;;  %v2924_v46 = vld [vmem:[%s4160_s0 + $0x2a0] sm:$0xff]   ;;  %v2943_v52 = vld [vmem:[%s4160_s0 + $0x2b8] sm:$0xff]   ;;  %v454_v34 = vadd.f32 %v453_v45, %v452_v49  ;;  %v455_v11 = vsel %vm147_vm2, %v1730_v0, 0.0  ;;  %v1835_v33 = vunpack.c.h.bf16 %v2975_v4 }
  0x41   :  { %v1838_v23 = vunpack.c.l.bf16 %v2984_v5  ;;  %v457_v32 = vsel %vm147_vm2, %v1731_v10, 0.0  ;;  %v473_v53 = vsel %vm147_vm2, %v1742_v56, 0.0  ;;  %v459_v49 = vsel %vm147_vm2, %v1734_v36, 0.0 }
  0x42   :  { %v456_v26 = vadd.f32 %v455_v11, %v454_v34  ;;  %v474_v0 = vsel %vm147_vm2, %v1743_v61, 0.0  ;;  %v476_v45 = vsel %vm147_vm2, %v1746_v62, 0.0  ;;  %v461_v51 = vsel %vm147_vm2, %v1735_v29, 0.0 }
  0x43   :  { %v463_v34 = vsel %vm147_vm2, %v1738_v15, 0.0  ;;  %v465_v10 = vsel %vm147_vm2, %v1739_v44, 0.0  ;;  %v475_v36 = vadd.f32 %v474_v0, %v473_v53  ;;  %v478_v56 = vsel %vm147_vm2, %v1747_v21, 0.0 }
  0x44   :  { %v458_v35 = vadd.f32 %v457_v32, %v456_v26  ;;  %v494_v19 = vsel %vm147_vm2, %v1758_v54, 0.0  ;;  %v495_v29 = vsel %vm147_vm2, %v1759_v42, 0.0  ;;  %v480_v25 = vsel %vm147_vm2, %v1750_v3, 0.0 }
  0x45   :  { %v477_v61 = vadd.f32 %v476_v45, %v475_v36  ;;  %v496_v15 = vadd.f32 %v495_v29, %v494_v19  ;;  %v497_v39 = vsel %vm147_vm2, %v1762_v57, 0.0  ;;  %v482_v62 = vsel %vm147_vm2, %v1751_v50, 0.0 }
  0x46   :  { %v460_v44 = vadd.f32 %v459_v49, %v458_v35  ;;  %v484_v38 = vsel %vm147_vm2, %v1754_v22, 0.0  ;;  %v499_v21 = vsel %vm147_vm2, %v1763_v43, 0.0  ;;  %v4190_v3 = vunpack.c.h.bf16 %v2828_v31 }
  0x47   :  { %v479_v11 = vadd.f32 %v478_v56, %v477_v61  ;;  %v498_v42 = vadd.f32 %v497_v39, %v496_v15  ;;  %v4191_v57 = vunpack.c.l.bf16 %v2862_v41  ;;  %v4192_v50 = vunpack.c.l.bf16 %v2849_v48 }
  0x48   :  { %v486_v54 = vsel %vm147_vm2, %v4190_v3, 0.0  ;;  %v462_v32 = vadd.f32 %v461_v51, %v460_v44  ;;  %v4193_v22 = vunpack.c.h.bf16 %v2862_v41  ;;  %v4194_v43 = vunpack.c.l.bf16 %v2871_v1 }
  0x49   :  { %v515_v30 = vsel %vm147_vm2, %v4191_v57, 0.0  ;;  %v501_v53 = vsel %vm147_vm2, %v4192_v50, 0.0  ;;  %v481_v26 = vadd.f32 %v480_v25, %v479_v11  ;;  %v500_v49 = vadd.f32 %v499_v21, %v498_v42 }
  0x4a   :  { %v516_v63 = vsel %vm147_vm2, %v4193_v22, 0.0  ;;  %v518_v31 = vsel %vm147_vm2, %v4194_v43, 0.0  ;;  %v4195_v0 = vunpack.c.h.bf16 %v2849_v48  ;;  %v464_v51 = vadd.f32 %v463_v34, %v462_v32 }
  0x4b   :  { %v517_v36 = vadd.f32 %v516_v63, %v515_v30  ;;  %v4196_v35 = vunpack.c.l.bf16 %v2857_v8  ;;  %v4197_v41 = vunpack.c.h.bf16 %v2857_v8  ;;  %v4198_v29 = vunpack.c.h.bf16 %v2871_v1 }
  0x4c   :  { %v503_v45 = vsel %vm147_vm2, %v4195_v0, 0.0  ;;  %v483_v25 = vadd.f32 %v482_v62, %v481_v26  ;;  %v502_v15 = vadd.f32 %v501_v53, %v500_v49  ;;  %v4199_v48 = vunpack.c.l.bf16 %v2891_v2 }
  0x4d   :  { %v505_v56 = vsel %vm147_vm2, %v4196_v35, 0.0  ;;  %v507_v19 = vsel %vm147_vm2, %v4197_v41, 0.0  ;;  %v520_v61 = vsel %vm147_vm2, %v4198_v29, 0.0  ;;  %v519_v39 = vadd.f32 %v518_v31, %v517_v36 }
  0x4e   :  { %v536_v44 = vsel %vm147_vm2, %v4199_v48, 0.0  ;;  %v466_v34 = vadd.f32 %v465_v10, %v464_v51  ;;  %v4200_v21 = vunpack.c.l.bf16 %v2876_v27  ;;  %v4201_v8 = vunpack.c.h.bf16 %v2891_v2 }
  0x4f   :  { %v4202_v1 = vunpack.c.l.bf16 %v2901_v14  ;;  %v485_v62 = vadd.f32 %v484_v38, %v483_v25  ;;  %v504_v57 = vadd.f32 %v503_v45, %v502_v15  ;;  %v521_v30 = vadd.f32 %v520_v61, %v519_v39 }
  0x50   :  { %v522_v11 = vsel %vm147_vm2, %v4200_v21, 0.0  ;;  %v537_v3 = vsel %vm147_vm2, %v4201_v8, 0.0  ;;  %v467_v50 = vrot.slane %v466_v34, 4  ;;  %v4203_v53 = vunpack.c.h.bf16 %v2876_v27 }
  0x51   :  { %v539_v42 = vsel %vm147_vm2, %v4202_v1, 0.0  ;;  %v538_v32 = vadd.f32 %v537_v3, %v536_v44  ;;  %v4204_v22 = vunpack.c.l.bf16 %v2886_v12  ;;  %v4205_v2 = vunpack.c.h.bf16 %v2901_v14 }
  0x52   :  { %v524_v10 = vsel %vm147_vm2, %v4203_v53, 0.0  ;;  %v487_v31 = vadd.f32 %v486_v54, %v485_v62  ;;  %v506_v26 = vadd.f32 %v505_v56, %v504_v57  ;;  %v523_v49 = vadd.f32 %v522_v11, %v521_v30 }
  0x53   :  { %v526_v63 = vsel %vm147_vm2, %v4204_v22, 0.0  ;;  %v541_v43 = vsel %vm147_vm2, %v4205_v2, 0.0  ;;  %v540_v38 = vadd.f32 %v539_v42, %v538_v32  ;;  %v4206_v0 = vunpack.c.h.bf16 %v2886_v12 }
  0x54   :  { %v4207_v27 = vunpack.c.l.bf16 %v2910_v9  ;;  %v4208_v51 = vunpack.c.l.bf16 %v2924_v46  ;;  %v4209_v14 = vunpack.c.h.bf16 %v2924_v46  ;;  %v488_v54 = vrot.slane %v487_v31, 4  ;;  %v3118_v46 = vld [vmem:[%s4160_s0 + $0x3a8] sm:$0xff]  }
  0x55   :  { %v528_v45 = vsel %vm147_vm2, %v4206_v0, 0.0  ;;  %v508_v56 = vadd.f32 %v507_v19, %v506_v26  ;;  %v525_v29 = vadd.f32 %v524_v10, %v523_v49  ;;  %v542_v61 = vadd.f32 %v541_v43, %v540_v38  ;;  %v2169_v43 = vld [vmem:[%s4160_s0 + $0x3b0] sm:$0xff]  }
  0x56   :  { %v543_v36 = vsel %vm147_vm2, %v4207_v27, 0.0  ;;  %v557_v35 = vsel %vm147_vm2, %v4208_v51, 0.0  ;;  %v558_v41 = vsel %vm147_vm2, %v4209_v14, 0.0  ;;  %v468_v25 = vadd.f32 %v467_v50, %v466_v34 }
  0x57   :  { %v4210_v12 = vunpack.c.h.bf16 %v2910_v9  ;;  %v559_v39 = vadd.f32 %v558_v41, %v557_v35  ;;  %v4211_v48 = vunpack.c.l.bf16 %v2929_v47  ;;  %v509_v21 = vrot.slane %v508_v56, 4 }
  0x58   :  { %v527_v11 = vadd.f32 %v526_v63, %v525_v29  ;;  %v544_v19 = vadd.f32 %v543_v36, %v542_v61  ;;  %v4212_v8 = vunpack.c.h.bf16 %v2929_v47  ;;  %v1839_v9 = vunpack.c.h.bf16 %v2984_v5 }
  0x59   :  { %v545_v15 = vsel %vm147_vm2, %v4210_v12, 0.0  ;;  %v560_v44 = vsel %vm147_vm2, %v4211_v48, 0.0  ;;  %v489_v3 = vadd.f32 %v488_v54, %v487_v31  ;;  %v4213_v1 = vunpack.c.l.bf16 %v2915_v16 }
  0x5a   :  { %v562_v34 = vsel %vm147_vm2, %v4212_v8, 0.0  ;;  %v561_v62 = vadd.f32 %v560_v44, %v559_v39  ;;  %v510_v57 = vadd.f32 %v509_v21, %v508_v56  ;;  %v529_v30 = vadd.f32 %v528_v45, %v527_v11 }
  0x5b   :  { %v547_v42 = vsel %vm147_vm2, %v4213_v1, 0.0  ;;  %v546_v32 = vadd.f32 %v545_v15, %v544_v19  ;;  %v4214_v50 = vunpack.c.l.bf16 %v2938_v18  ;;  %v1842_v10 = vunpack.c.l.bf16 %v3118_v46 }
  0x5c   :  { %v1843_v47 = vunpack.c.h.bf16 %v3118_v46  ;;  %v4215_v22 = vunpack.c.h.bf16 %v2915_v16  ;;  %v563_v2 = vadd.f32 %v562_v34, %v561_v62  ;;  %v469_v31 = vrot.slane %v468_v25, 2 }
  0x5d   :  { %v564_v53 = vsel %vm147_vm2, %v4214_v50, 0.0  ;;  %v530_v26 = vrot.slane %v529_v30, 4  ;;  %v548_v49 = vadd.f32 %v547_v42, %v546_v32  ;;  %v4216_v38 = vunpack.c.h.bf16 %v2938_v18 }
  0x5e   :  { %v549_v63 = vsel %vm147_vm2, %v4215_v22, 0.0  ;;  %v490_v45 = vrot.slane %v489_v3, 2  ;;  %v565_v27 = vadd.f32 %v564_v53, %v563_v2  ;;  %v4217_v36 = vunpack.c.l.bf16 %v2952_v37  ;;  %v2170_v2 = vld [vmem:[%s4160_s0 + $0x3b8] sm:$0xff]  }
  0x5f   :  { %v566_v0 = vsel %vm147_vm2, %v4216_v38, 0.0  ;;  %v4218_v51 = vunpack.c.h.bf16 %v2952_v37  ;;  %v511_v14 = vrot.slane %v510_v57, 2  ;;  %v531_v41 = vadd.f32 %v530_v26, %v529_v30 }
  0x60   :  { %v578_v16 = vsel %vm147_vm2, %v4217_v36, 0.0  ;;  %v550_v54 = vadd.f32 %v549_v63, %v548_v49  ;;  %v4219_v56 = vunpack.c.l.bf16 %v2943_v52  ;;  %v1846_v18 = vunpack.c.l.bf16 %v2169_v43 }
  0x61   :  { %v579_v35 = vsel %vm147_vm2, %v4218_v51, 0.0  ;;  %v567_v61 = vadd.f32 %v566_v0, %v565_v27  ;;  %v4220_v15 = vunpack.c.l.bf16 %v2957_v13  ;;  %v532_v48 = vrot.slane %v531_v41, 2 }
  0x62   :  { %v568_v29 = vsel %vm147_vm2, %v4219_v56, 0.0  ;;  %v580_v12 = vadd.f32 %v579_v35, %v578_v16  ;;  %v551_v44 = vrot.slane %v550_v54, 4  ;;  %v4221_v37 = vunpack.c.h.bf16 %v2943_v52 }
  0x63   :  { %v581_v39 = vsel %vm147_vm2, %v4220_v15, 0.0  ;;  %v4222_v21 = vunpack.c.h.bf16 %v2957_v13  ;;  %v1847_v19 = vunpack.c.h.bf16 %v2169_v43  ;;  %v470_v8 = vadd.f32 %v469_v31, %v468_v25 }
  0x64   :  { %v570_v46 = vsel %vm147_vm2, %v4221_v37, 0.0  ;;  %v569_v34 = vadd.f32 %v568_v29, %v567_v61  ;;  %v582_v1 = vadd.f32 %v581_v39, %v580_v12  ;;  %v491_v42 = vadd.f32 %v490_v45, %v489_v3 }
  0x65   :  { %v583_v11 = vsel %vm147_vm2, %v4222_v21, 0.0  ;;  %v512_v62 = vadd.f32 %v511_v14, %v510_v57  ;;  %v552_v30 = vadd.f32 %v551_v44, %v550_v54  ;;  %v4223_v32 = vunpack.c.l.bf16 %v2966_v55 }
  0x66   :  { %v571_v53 = vadd.f32 %v570_v46, %v569_v34  ;;  %v584_v22 = vadd.f32 %v583_v11, %v582_v1  ;;  %v587_v52 = vsel %vm147_vm2, %v1831_v17, 0.0  ;;  %v599_v13 = vsel %vm147_vm2, %v1838_v23, 0.0 }
  0x67   :  { %v585_v50 = vsel %vm147_vm2, %v4223_v32, 0.0  ;;  %v533_v25 = vadd.f32 %v532_v48, %v531_v41  ;;  %v553_v63 = vrot.slane %v552_v30, 2  ;;  %v600_v3 = vsel %vm147_vm2, %v1839_v9, 0.0 }
  0x68   :  { %v602_v57 = vsel %vm147_vm2, %v1842_v10, 0.0  ;;  %v471_v43 = vrot.slane %v470_v8, 1  ;;  %v572_v31 = vrot.slane %v571_v53, 4  ;;  %v586_v26 = vadd.f32 %v585_v50, %v584_v22 }
  0x69   :  { %v601_v55 = vadd.f32 %v600_v3, %v599_v13  ;;  %v492_v49 = vrot.slane %v491_v42, 1  ;;  %v513_v17 = vrot.slane %v512_v62, 1  ;;  %v589_v23 = vsel %vm147_vm2, %v1834_v7, 0.0  ;;  %v3249_v13 = vld [vmem:[%s4160_s0 + $0xc8] sm:$0xff]  }
  0x6a   :  { %v604_v5 = vsel %vm147_vm2, %v1843_v47, 0.0  ;;  %v554_v38 = vadd.f32 %v553_v63, %v552_v30  ;;  %v573_v9 = vadd.f32 %v572_v31, %v571_v53  ;;  %v588_v0 = vadd.f32 %v587_v52, %v586_v26 }
  0x6b   :  { %v603_v10 = vadd.f32 %v602_v57, %v601_v55  ;;  %v1850_v45 = vunpack.c.l.bf16 %v2170_v2  ;;  %v534_v27 = vrot.slane %v533_v25, 1  ;;  %v591_v36 = vsel %vm147_vm2, %v1835_v33, 0.0  ;;  %v3256_v57 = vld [vmem:[%s4160_s0 + $0xd0] sm:$0xff]   ;;  %v3265_v55 = vld [vmem:[%s4160_s0 + $0xd8] sm:$0xff]  }
  0x6c   :  { %v606_v16 = vsel %vm147_vm2, %v1846_v18, 0.0  ;;  %v4224_v51 = vrot.slane %v2893_v60, 2  ;;  %v574_v7 = vrot.slane %v573_v9, 2  ;;  %v590_v14 = vadd.f32 %v589_v23, %v588_v0 }
  0x6d   :  { %v605_v47 = vadd.f32 %v604_v5, %v603_v10  ;;  %v1851_v41 = vunpack.c.h.bf16 %v2170_v2  ;;  %v472_v54 = vadd.f32 %v471_v43, %v470_v8  ;;  %v493_v56 = vadd.f32 %v492_v49, %v491_v42  ;;  %v3352_v8 = vld [vmem:[%s4160_s0 + $0x258] sm:$0xff]  }
  0x6e   :  { %v3184_v35 = vadd.f32 %v4224_v51, %v2893_v60  ;;  %v608_v29 = vsel %vm147_vm2, %v1847_v19, 0.0  ;;  %v514_v61 = vadd.f32 %v513_v17, %v512_v62  ;;  %v555_v12 = vrot.slane %v554_v38, 1 }
  0x6f   :  { %v592_v4 = vadd.f32 %v591_v36, %v590_v14  ;;  %v607_v15 = vadd.f32 %v606_v16, %v605_v47  ;;  %v4225_v33 = vrot.slane %v2767_v20, 1  ;;  %v535_v39 = vadd.f32 %v534_v27, %v533_v25  ;;  %v3288_v36 = vld [vmem:[%s4160_s0 + $0x150] sm:$0xff]   ;;  %v3293_v16 = vld [vmem:[%s4160_s0 + $0x158] sm:$0xff]  }
  0x70   :  { %v575_v60 = vadd.f32 %v574_v7, %v573_v9  ;;  %v610_v48 = vsel %vm147_vm2, %v1850_v45, 0.0  ;;  %v4226_v44 = vrot.slane %v2800_v58, 1  ;;  %v4227_v46 = vrot.slane %v2878_v59, 1  ;;  %v3278_v9 = vld [vmem:[%s4160_s0 + $0x148] sm:$0xff]  }
  0x71   :  { %v3190_v18 = vadd.f32 %v4225_v33, %v2767_v20  ;;  %v593_v11 = vrot.slane %v592_v4, 4  ;;  %v609_v19 = vadd.f32 %v608_v29, %v607_v15  ;;  %v3206_v20 = vld [vmem:[%s4160_s0 + $0x40] sm:$0xff]   ;;  %v612_v34 = vsel %vm147_vm2, %v1851_v41, 0.0  ;;  %v3400_v15 = vld [vmem:[%s4160_s0 + $0x350] sm:$0xff]  }
  0x72   :  { %v3196_v37 = vadd.f32 %v4226_v44, %v2800_v58  ;;  %v3201_v21 = vadd.f32 %v4227_v46, %v2878_v59  ;;  %v3211_v1 = vadd.f32 %v472_v54, %v2775_v28  ;;  %v3214_v58 = vadd.f32 %v493_v56, %v2777_v40  ;;  %v3219_v59 = vld [vmem:[%s4160_s0 + $0x48] sm:$0xff]   ;;  %v3229_v28 = vld [vmem:[%s4160_s0 + $0x50] sm:$0xff]   ;;  %v3234_v40 = vld [vmem:[%s4160_s0 + $0x58] sm:$0xff]  }
  0x73   :  { %v3221_v42 = vadd.f32 %v555_v12, %v554_v38  ;;  %v594_v62 = vadd.f32 %v593_v11, %v592_v4  ;;  %v611_v30 = vadd.f32 %v610_v48, %v609_v19  ;;  %v3224_v32 = vadd.f32 %v514_v61, %v2785_v24  ;;  %v3244_v24 = vld [vmem:[%s4160_s0 + $0xc0] sm:$0xff]   ;;  %v3307_v54 = vld [vmem:[%s4160_s0 + $0x1c8] sm:$0xff]   ;;  %v3316_v4 = vld [vmem:[%s4160_s0 + $0x1d0] sm:$0xff]  }
  0x74   :  { %v576_v50 = vrot.slane %v575_v60, 1  ;;  %v3237_v53 = vadd.f32 %v535_v39, %v2787_v6  ;;  %v1854_v22 = vunpack.c.l.bf16 %v3206_v20  ;;  %v1855_v52 = vunpack.c.h.bf16 %v3206_v20  ;;  %v3273_v38 = vld [vmem:[%s4160_s0 + $0x140] sm:$0xff]   ;;  %v3325_v48 = vld [vmem:[%s4160_s0 + $0x1d8] sm:$0xff]  }
  0x75   :  { %v595_v25 = vrot.slane %v594_v62, 2  ;;  %v613_v63 = vadd.f32 %v612_v34, %v611_v30  ;;  %v1858_v3 = vunpack.c.l.bf16 %v3219_v59  ;;  %v1859_v6 = vunpack.c.h.bf16 %v3219_v59  ;;  %v3302_v41 = vld [vmem:[%s4160_s0 + $0x1c0] sm:$0xff]   ;;  %v3343_v30 = vld [vmem:[%s4160_s0 + $0x250] sm:$0xff]   ;;  %v3409_v19 = vld [vmem:[%s4160_s0 + $0x358] sm:$0xff]  }
  0x76   :  { %v1862_v2 = vunpack.c.l.bf16 %v3229_v28  ;;  %v1863_v43 = vunpack.c.h.bf16 %v3229_v28  ;;  %v1866_v31 = vunpack.c.l.bf16 %v3234_v40  ;;  %v1867_v26 = vunpack.c.h.bf16 %v3234_v40  ;;  %v3330_v44 = vld [vmem:[%s4160_s0 + $0x240] sm:$0xff]   ;;  %v3371_v34 = vld [vmem:[%s4160_s0 + $0x2d0] sm:$0xff]  }
  0x77   :  { %v614_v49 = vrot.slane %v613_v63, 4  ;;  %v1870_v17 = vunpack.c.l.bf16 %v3244_v24  ;;  %v1871_v23 = vunpack.c.h.bf16 %v3244_v24  ;;  %v1874_v5 = vunpack.c.l.bf16 %v3249_v13  ;;  %v3385_v33 = vld [vmem:[%s4160_s0 + $0x340] sm:$0xff]  }
  0x78   :  { %v3280_v0 = vadd.f32 %v576_v50, %v575_v60  ;;  %v1875_v10 = vunpack.c.h.bf16 %v3249_v13  ;;  %v1878_v45 = vunpack.c.l.bf16 %v3256_v57  ;;  %v3295_v51 = vadd.f32 %v595_v25, %v594_v62  ;;  %v3338_v62 = vld [vmem:[%s4160_s0 + $0x248] sm:$0xff]   ;;  %v3357_v60 = vld [vmem:[%s4160_s0 + $0x2c0] sm:$0xff]  }
  0x79   :  { %v615_v7 = vadd.f32 %v614_v49, %v613_v63  ;;  %v1886_v56 = vunpack.c.l.bf16 %v3273_v38  ;;  %v3366_v49 = vld [vmem:[%s4160_s0 + $0x2c8] sm:$0xff]   ;;  %v3380_v63 = vld [vmem:[%s4160_s0 + $0x2d8] sm:$0xff]   ;;  %v756_v14 = vsel %vm147_vm2, %v1854_v22, 0.0  ;;  %v757_v61 = vsel %vm147_vm2, %v1855_v52, 0.0 }
  0x7a   :  { %v3395_v25 = vld [vmem:[%s4160_s0 + $0x348] sm:$0xff]   ;;  %v1963_v39 = vunpack.c.h.bf16 %v3409_v19  ;;  %v758_v29 = vadd.f32 %v757_v61, %v756_v14  ;;  %v759_v27 = vsel %vm147_vm2, %v1858_v3, 0.0  ;;  %v761_v47 = vsel %vm147_vm2, %v1859_v6, 0.0 }
  0x7b   :  { %v616_v46 = vrot.slane %v615_v7, 2  ;;  %v1955_v12 = vunpack.c.h.bf16 %v3395_v25  ;;  %v763_v20 = vsel %vm147_vm2, %v1862_v2, 0.0  ;;  %v777_v22 = vsel %vm147_vm2, %v1870_v17, 0.0 }
  0x7c   :  { %v760_v52 = vadd.f32 %v759_v27, %v758_v29  ;;  %v765_v14 = vsel %vm147_vm2, %v1863_v43, 0.0  ;;  %v778_v3 = vsel %vm147_vm2, %v1871_v23, 0.0  ;;  %v780_v59 = vsel %vm147_vm2, %v1874_v5, 0.0 }
  0x7d   :  { %v3387_v11 = vadd.f32 %v616_v46, %v615_v7  ;;  %v3418_v7 = vld [vmem:[%s4160_s0 + $0x3c0] sm:$0xff]   ;;  %v767_v6 = vsel %vm147_vm2, %v1866_v31, 0.0  ;;  %v769_v2 = vsel %vm147_vm2, %v1867_v26, 0.0  ;;  %v779_v17 = vadd.f32 %v778_v3, %v777_v22 }
  0x7e   :  { %v1966_v46 = vunpack.c.l.bf16 %v3418_v7  ;;  %v1967_v50 = vunpack.c.h.bf16 %v3418_v7  ;;  %v782_v28 = vsel %vm147_vm2, %v1875_v10, 0.0  ;;  %v762_v24 = vadd.f32 %v761_v47, %v760_v52 }
  0x7f   :  { %v784_v43 = vsel %vm147_vm2, %v1878_v45, 0.0  ;;  %v798_v23 = vsel %vm147_vm2, %v1886_v56, 0.0  ;;  %v4228_v31 = vunpack.c.h.bf16 %v3273_v38  ;;  %v781_v5 = vadd.f32 %v780_v59, %v779_v17 }
  0x80   :  { %v4229_v26 = vunpack.c.h.bf16 %v3256_v57  ;;  %v4230_v10 = vunpack.c.l.bf16 %v3278_v9  ;;  %v764_v29 = vadd.f32 %v763_v20, %v762_v24  ;;  %v4231_v45 = vunpack.c.l.bf16 %v3265_v55 }
  0x81   :  { %v799_v40 = vsel %vm147_vm2, %v4228_v31, 0.0  ;;  %v4232_v56 = vunpack.c.h.bf16 %v3265_v55  ;;  %v4233_v22 = vunpack.c.h.bf16 %v3278_v9  ;;  %v783_v52 = vadd.f32 %v782_v28, %v781_v5 }
  0x82   :  { %v786_v13 = vsel %vm147_vm2, %v4229_v26, 0.0  ;;  %v800_v27 = vadd.f32 %v799_v40, %v798_v23  ;;  %v801_v47 = vsel %vm147_vm2, %v4230_v10, 0.0  ;;  %v788_v61 = vsel %vm147_vm2, %v4231_v45, 0.0 }
  0x83   :  { %v790_v38 = vsel %vm147_vm2, %v4232_v56, 0.0  ;;  %v803_v57 = vsel %vm147_vm2, %v4233_v22, 0.0  ;;  %v4234_v59 = vunpack.c.l.bf16 %v3288_v36  ;;  %v4235_v20 = vunpack.c.l.bf16 %v3302_v41 }
  0x84   :  { %v802_v3 = vadd.f32 %v801_v47, %v800_v27  ;;  %v766_v23 = vadd.f32 %v765_v14, %v764_v29  ;;  %v4236_v31 = vunpack.c.h.bf16 %v3288_v36  ;;  %v4237_v40 = vunpack.c.h.bf16 %v3302_v41 }
  0x85   :  { %v805_v17 = vsel %vm147_vm2, %v4234_v59, 0.0  ;;  %v819_v24 = vsel %vm147_vm2, %v4235_v20, 0.0  ;;  %v4238_v28 = vunpack.c.l.bf16 %v3307_v54  ;;  %v785_v26 = vadd.f32 %v784_v43, %v783_v52 }
  0x86   :  { %v807_v55 = vsel %vm147_vm2, %v4236_v31, 0.0  ;;  %v820_v9 = vsel %vm147_vm2, %v4237_v40, 0.0  ;;  %v804_v27 = vadd.f32 %v803_v57, %v802_v3  ;;  %v4239_v10 = vunpack.c.l.bf16 %v3293_v16 }
  0x87   :  { %v822_v5 = vsel %vm147_vm2, %v4238_v28, 0.0  ;;  %v821_v45 = vadd.f32 %v820_v9, %v819_v24  ;;  %v768_v14 = vadd.f32 %v767_v6, %v766_v23  ;;  %v4240_v36 = vunpack.c.h.bf16 %v3293_v16 }
  0x88   :  { %v809_v47 = vsel %vm147_vm2, %v4239_v10, 0.0  ;;  %v4241_v41 = vunpack.c.h.bf16 %v3307_v54  ;;  %v4242_v22 = vunpack.c.l.bf16 %v3316_v4  ;;  %v787_v43 = vadd.f32 %v786_v13, %v785_v26 }
  0x89   :  { %v811_v29 = vsel %vm147_vm2, %v4240_v36, 0.0  ;;  %v806_v57 = vadd.f32 %v805_v17, %v804_v27  ;;  %v823_v52 = vadd.f32 %v822_v5, %v821_v45  ;;  %v4243_v3 = vunpack.c.l.bf16 %v3330_v44 }
  0x8a   :  { %v824_v56 = vsel %vm147_vm2, %v4241_v41, 0.0  ;;  %v826_v59 = vsel %vm147_vm2, %v4242_v22, 0.0  ;;  %v770_v6 = vadd.f32 %v769_v2, %v768_v14  ;;  %v4244_v16 = vunpack.c.h.bf16 %v3316_v4 }
  0x8b   :  { %v840_v20 = vsel %vm147_vm2, %v4243_v3, 0.0  ;;  %v4245_v54 = vunpack.c.h.bf16 %v3330_v44  ;;  %v4246_v31 = vunpack.c.l.bf16 %v3338_v62  ;;  %v789_v13 = vadd.f32 %v788_v61, %v787_v43 }
  0x8c   :  { %v828_v24 = vsel %vm147_vm2, %v4244_v16, 0.0  ;;  %v808_v17 = vadd.f32 %v807_v55, %v806_v57  ;;  %v825_v9 = vadd.f32 %v824_v56, %v823_v52  ;;  %v771_v5 = vrot.slane %v770_v6, 4 }
  0x8d   :  { %v841_v23 = vsel %vm147_vm2, %v4245_v54, 0.0  ;;  %v843_v40 = vsel %vm147_vm2, %v4246_v31, 0.0  ;;  %v4247_v26 = vunpack.c.l.bf16 %v3325_v48  ;;  %v4248_v4 = vunpack.c.h.bf16 %v3325_v48 }
  0x8e   :  { %v842_v28 = vadd.f32 %v841_v23, %v840_v20  ;;  %v4249_v44 = vunpack.c.h.bf16 %v3338_v62  ;;  %v791_v45 = vadd.f32 %v790_v38, %v789_v13  ;;  %v810_v14 = vadd.f32 %v809_v47, %v808_v17  ;;  %v3549_v62 = vld [vmem:[%s4160_s0 + $0x3c8] sm:$0xff]  }
  0x8f   :  { %v830_v2 = vsel %vm147_vm2, %v4247_v26, 0.0  ;;  %v832_v27 = vsel %vm147_vm2, %v4248_v4, 0.0  ;;  %v827_v36 = vadd.f32 %v826_v59, %v825_v9  ;;  %v772_v55 = vadd.f32 %v771_v5, %v770_v6 }
  0x90   :  { %v845_v10 = vsel %vm147_vm2, %v4249_v44, 0.0  ;;  %v844_v61 = vadd.f32 %v843_v40, %v842_v28  ;;  %v4250_v41 = vunpack.c.l.bf16 %v3343_v30  ;;  %v4251_v22 = vunpack.c.l.bf16 %v3357_v60 }
  0x91   :  { %v4252_v48 = vunpack.c.h.bf16 %v3357_v60  ;;  %v792_v38 = vrot.slane %v791_v45, 4  ;;  %v812_v47 = vadd.f32 %v811_v29, %v810_v14  ;;  %v829_v59 = vadd.f32 %v828_v24, %v827_v36 }
  0x92   :  { %v847_v56 = vsel %vm147_vm2, %v4250_v41, 0.0  ;;  %v861_v43 = vsel %vm147_vm2, %v4251_v22, 0.0  ;;  %v846_v52 = vadd.f32 %v845_v10, %v844_v61  ;;  %v4253_v3 = vunpack.c.h.bf16 %v3343_v30  ;;  %v3564_v30 = vld [vmem:[%s4160_s0 + $0x3d0] sm:$0xff]  }
  0x93   :  { %v862_v57 = vsel %vm147_vm2, %v4252_v48, 0.0  ;;  %v4254_v16 = vunpack.c.l.bf16 %v3366_v49  ;;  %v4255_v54 = vunpack.c.h.bf16 %v3366_v49  ;;  %v793_v31 = vadd.f32 %v792_v38, %v791_v45 }
  0x94   :  { %v849_v20 = vsel %vm147_vm2, %v4253_v3, 0.0  ;;  %v863_v6 = vadd.f32 %v862_v57, %v861_v43  ;;  %v813_v40 = vrot.slane %v812_v47, 4  ;;  %v831_v13 = vadd.f32 %v830_v2, %v829_v59 }
  0x95   :  { %v864_v60 = vsel %vm147_vm2, %v4254_v16, 0.0  ;;  %v866_v23 = vsel %vm147_vm2, %v4255_v54, 0.0  ;;  %v848_v17 = vadd.f32 %v847_v56, %v846_v52  ;;  %v1970_v29 = vunpack.c.l.bf16 %v3549_v62 }
  0x96   :  { %v773_v24 = vrot.slane %v772_v55, 2  ;;  %v4256_v9 = vunpack.c.l.bf16 %v3352_v8  ;;  %v865_v5 = vadd.f32 %v864_v60, %v863_v6  ;;  %v814_v49 = vadd.f32 %v813_v40, %v812_v47 }
  0x97   :  { %v833_v26 = vadd.f32 %v832_v27, %v831_v13  ;;  %v850_v4 = vadd.f32 %v849_v20, %v848_v17  ;;  %v4257_v44 = vunpack.c.l.bf16 %v3371_v34  ;;  %v1971_v10 = vunpack.c.h.bf16 %v3549_v62 }
  0x98   :  { %v851_v28 = vsel %vm147_vm2, %v4256_v9, 0.0  ;;  %v794_v45 = vrot.slane %v793_v31, 2  ;;  %v4258_v14 = vunpack.c.h.bf16 %v3352_v8  ;;  %v867_v61 = vadd.f32 %v866_v23, %v865_v5 }
  0x99   :  { %v868_v2 = vsel %vm147_vm2, %v4257_v44, 0.0  ;;  %v1974_v41 = vunpack.c.l.bf16 %v3564_v30  ;;  %v834_v56 = vrot.slane %v833_v26, 4  ;;  %v852_v22 = vadd.f32 %v851_v28, %v850_v4 }
  0x9a   :  { %v853_v36 = vsel %vm147_vm2, %v4258_v14, 0.0  ;;  %v4259_v43 = vunpack.c.h.bf16 %v3371_v34  ;;  %v815_v48 = vrot.slane %v814_v49, 2  ;;  %v869_v57 = vadd.f32 %v868_v2, %v867_v61 }
  0x9b   :  { %v4260_v38 = vunpack.c.l.bf16 %v3385_v33  ;;  %v4261_v47 = vunpack.c.h.bf16 %v3385_v33  ;;  %v774_v59 = vadd.f32 %v773_v24, %v772_v55  ;;  %v835_v52 = vadd.f32 %v834_v56, %v833_v26 }
  0x9c   :  { %v870_v27 = vsel %vm147_vm2, %v4259_v43, 0.0  ;;  %v854_v3 = vadd.f32 %v853_v36, %v852_v22  ;;  %v4262_v20 = vunpack.c.l.bf16 %v3380_v63  ;;  %v795_v34 = vadd.f32 %v794_v45, %v793_v31 }
  0x9d   :  { %v882_v62 = vsel %vm147_vm2, %v4260_v38, 0.0  ;;  %v883_v8 = vsel %vm147_vm2, %v4261_v47, 0.0  ;;  %v871_v16 = vadd.f32 %v870_v27, %v869_v57  ;;  %v4263_v54 = vunpack.c.l.bf16 %v3395_v25 }
  0x9e   :  { %v872_v6 = vsel %vm147_vm2, %v4262_v20, 0.0  ;;  %v884_v60 = vadd.f32 %v883_v8, %v882_v62  ;;  %v836_v40 = vrot.slane %v835_v52, 2  ;;  %v855_v13 = vrot.slane %v854_v3, 4 }
  0x9f   :  { %v885_v23 = vsel %vm147_vm2, %v4263_v54, 0.0  ;;  %v4264_v33 = vunpack.c.h.bf16 %v3380_v63  ;;  %v887_v55 = vsel %vm147_vm2, %v1955_v12, 0.0  ;;  %v1975_v24 = vunpack.c.h.bf16 %v3564_v30  ;;  %v2202_v12 = vld [vmem:[%s4160_s0 + $0x3d8] sm:$0xff]  }
  0xa0   :  { %v816_v9 = vadd.f32 %v815_v48, %v814_v49  ;;  %v873_v31 = vadd.f32 %v872_v6, %v871_v16  ;;  %v886_v28 = vadd.f32 %v885_v23, %v884_v60  ;;  %v775_v5 = vrot.slane %v774_v59, 1 }
  0xa1   :  { %v874_v17 = vsel %vm147_vm2, %v4264_v33, 0.0  ;;  %v837_v26 = vadd.f32 %v836_v40, %v835_v52  ;;  %v856_v4 = vadd.f32 %v855_v13, %v854_v3  ;;  %v4265_v44 = vunpack.c.l.bf16 %v3400_v15 }
  0xa2   :  { %v796_v45 = vrot.slane %v795_v34, 1  ;;  %v875_v63 = vadd.f32 %v874_v17, %v873_v31  ;;  %v888_v14 = vadd.f32 %v887_v55, %v886_v28  ;;  %v903_v25 = vsel %vm147_vm2, %v1966_v46, 0.0 }
  0xa3   :  { %v889_v2 = vsel %vm147_vm2, %v4265_v44, 0.0  ;;  %v857_v30 = vrot.slane %v856_v4, 2  ;;  %v4266_v49 = vunpack.c.h.bf16 %v3400_v15  ;;  %v904_v61 = vsel %vm147_vm2, %v1967_v50, 0.0  ;;  %v3668_v44 = vld [vmem:[%s4160_s0 + $0x78] sm:$0xff]  }
  0xa4   :  { %v906_v56 = vsel %vm147_vm2, %v1970_v29, 0.0  ;;  %v817_v22 = vrot.slane %v816_v9, 1  ;;  %v876_v43 = vrot.slane %v875_v63, 4  ;;  %v890_v27 = vadd.f32 %v889_v2, %v888_v14 }
  0xa5   :  { %v891_v36 = vsel %vm147_vm2, %v4266_v49, 0.0  ;;  %v905_v48 = vadd.f32 %v904_v61, %v903_v25  ;;  %v838_v46 = vrot.slane %v837_v26, 1  ;;  %v858_v57 = vadd.f32 %v857_v30, %v856_v4  ;;  %v3663_v4 = vld [vmem:[%s4160_s0 + $0x70] sm:$0xff]  }
  0xa6   :  { %v4267_v38 = vunpack.c.l.bf16 %v3409_v19  ;;  %v908_v15 = vsel %vm147_vm2, %v1971_v10, 0.0  ;;  %v1978_v47 = vunpack.c.l.bf16 %v2202_v12  ;;  %v877_v8 = vadd.f32 %v876_v43, %v875_v63 }
  0xa7   :  { %v892_v52 = vadd.f32 %v891_v36, %v890_v27  ;;  %v907_v7 = vadd.f32 %v906_v56, %v905_v48  ;;  %v1979_v3 = vunpack.c.h.bf16 %v2202_v12  ;;  %v859_v50 = vrot.slane %v858_v57, 1  ;;  %v3684_v12 = vld [vmem:[%s4160_s0 + $0xe8] sm:$0xff]   ;;  %v3692_v56 = vld [vmem:[%s4160_s0 + $0xf0] sm:$0xff]  }
  0xa8   :  { %v893_v62 = vsel %vm147_vm2, %v4267_v38, 0.0  ;;  %v895_v29 = vsel %vm147_vm2, %v1963_v39, 0.0  ;;  %v910_v20 = vsel %vm147_vm2, %v1974_v41, 0.0  ;;  %v776_v6 = vadd.f32 %v775_v5, %v774_v59  ;;  %v3710_v38 = vld [vmem:[%s4160_s0 + $0x168] sm:$0xff]  }
  0xa9   :  { %v878_v16 = vrot.slane %v877_v8, 2  ;;  %v894_v60 = vadd.f32 %v893_v62, %v892_v52  ;;  %v909_v54 = vadd.f32 %v908_v15, %v907_v7  ;;  %v797_v23 = vadd.f32 %v796_v45, %v795_v34  ;;  %v3719_v52 = vld [vmem:[%s4160_s0 + $0x170] sm:$0xff]  }
  0xaa   :  { %v818_v40 = vadd.f32 %v817_v22, %v816_v9  ;;  %v839_v13 = vadd.f32 %v838_v46, %v837_v26  ;;  %v912_v10 = vsel %vm147_vm2, %v1975_v24, 0.0  ;;  %v624_v33 = vadd.f32 %v3221_v42, %v3190_v18  ;;  %v3639_v24 = vld [vmem:[%s4160_s0 + $0x60] sm:$0xff]   ;;  %v3697_v22 = vld [vmem:[%s4160_s0 + $0xf8] sm:$0xff]  }
  0xab   :  { %v879_v17 = vadd.f32 %v878_v16, %v877_v8  ;;  %v896_v55 = vadd.f32 %v895_v29, %v894_v60  ;;  %v911_v31 = vadd.f32 %v910_v20, %v909_v54  ;;  %v4268_v39 = vrot.slane %v3295_v51, 1  ;;  %v3728_v20 = vld [vmem:[%s4160_s0 + $0x178] sm:$0xff]   ;;  %v3791_v18 = vld [vmem:[%s4160_s0 + $0x2e0] sm:$0xff]  }
  0xac   :  { %v3633_v41 = vadd.f32 %v3280_v0, %v3196_v37  ;;  %v860_v59 = vadd.f32 %v859_v50, %v858_v57  ;;  %v914_v34 = vsel %vm147_vm2, %v1978_v47, 0.0  ;;  %v916_v28 = vsel %vm147_vm2, %v1979_v3, 0.0  ;;  %v3705_v57 = vld [vmem:[%s4160_s0 + $0x160] sm:$0xff]  }
  0xad   :  { %v3629_v19 = vadd.f32 %v4268_v39, %v3295_v51  ;;  %v897_v42 = vrot.slane %v896_v55, 4  ;;  %v913_v9 = vadd.f32 %v912_v10, %v911_v31  ;;  %v3646_v51 = vld [vmem:[%s4160_s0 + $0x68] sm:$0xff]   ;;  %v3649_v37 = vadd.f32 %v776_v6, %v3211_v1  ;;  %v3733_v6 = vld [vmem:[%s4160_s0 + $0x1e0] sm:$0xff]   ;;  %v3758_v31 = vld [vmem:[%s4160_s0 + $0x1f8] sm:$0xff]  }
  0xae   :  { %v3652_v0 = vadd.f32 %v797_v23, %v3214_v58  ;;  %v3655_v5 = vadd.f32 %v818_v40, %v3224_v32  ;;  %v3658_v26 = vadd.f32 %v839_v13, %v3237_v53  ;;  %v880_v1 = vrot.slane %v879_v17, 1  ;;  %v3674_v32 = vld [vmem:[%s4160_s0 + $0xe0] sm:$0xff]   ;;  %v3743_v40 = vld [vmem:[%s4160_s0 + $0x1e8] sm:$0xff]   ;;  %v3748_v13 = vld [vmem:[%s4160_s0 + $0x1f0] sm:$0xff]  }
  0xaf   :  { %v898_v2 = vadd.f32 %v897_v42, %v896_v55  ;;  %v915_v58 = vadd.f32 %v914_v34, %v913_v9  ;;  %v1982_v45 = vunpack.c.l.bf16 %v3639_v24  ;;  %v3676_v53 = vadd.f32 %v860_v59, %v624_v33  ;;  %v3763_v39 = vld [vmem:[%s4160_s0 + $0x260] sm:$0xff]   ;;  %v3805_v9 = vld [vmem:[%s4160_s0 + $0x2f0] sm:$0xff]   ;;  %v3856_v34 = vld [vmem:[%s4160_s0 + $0x3e8] sm:$0xff]  }
  0xb0   :  { %v1983_v63 = vunpack.c.h.bf16 %v3639_v24  ;;  %v1986_v14 = vunpack.c.l.bf16 %v3646_v51  ;;  %v1987_v25 = vunpack.c.h.bf16 %v3646_v51  ;;  %v1990_v49 = vunpack.c.l.bf16 %v3663_v4  ;;  %v3819_v42 = vld [vmem:[%s4160_s0 + $0x360] sm:$0xff]   ;;  %v3865_v33 = vld [vmem:[%s4160_s0 + $0x3f0] sm:$0xff]  }
  0xb1   :  { %v917_v30 = vadd.f32 %v916_v28, %v915_v58  ;;  %v1991_v36 = vunpack.c.h.bf16 %v3663_v4  ;;  %v1994_v61 = vunpack.c.l.bf16 %v3668_v44  ;;  %v899_v43 = vrot.slane %v898_v2, 2  ;;  %v3772_v28 = vld [vmem:[%s4160_s0 + $0x268] sm:$0xff]   ;;  %v3847_v29 = vld [vmem:[%s4160_s0 + $0x3e0] sm:$0xff]  }
  0xb2   :  { %v1995_v27 = vunpack.c.h.bf16 %v3668_v44  ;;  %v1998_v48 = vunpack.c.l.bf16 %v3674_v32  ;;  %v1999_v46 = vunpack.c.h.bf16 %v3674_v32  ;;  %v3712_v62 = vadd.f32 %v880_v1, %v879_v17  ;;  %v3777_v1 = vld [vmem:[%s4160_s0 + $0x270] sm:$0xff]   ;;  %v3828_v58 = vld [vmem:[%s4160_s0 + $0x368] sm:$0xff]  }
  0xb3   :  { %v918_v15 = vrot.slane %v917_v30, 4  ;;  %v2002_v47 = vunpack.c.l.bf16 %v3684_v12  ;;  %v3750_v10 = vadd.f32 %v899_v43, %v898_v2  ;;  %v3800_v43 = vld [vmem:[%s4160_s0 + $0x2e8] sm:$0xff]   ;;  %v3833_v17 = vld [vmem:[%s4160_s0 + $0x370] sm:$0xff]   ;;  %v3842_v2 = vld [vmem:[%s4160_s0 + $0x378] sm:$0xff]   ;;  %v2094_v7 = vunpack.c.l.bf16 %v3847_v29 }
  0xb4   :  { %v2095_v50 = vunpack.c.h.bf16 %v3847_v29  ;;  %v1060_v3 = vsel %vm147_vm2, %v1982_v45, 0.0  ;;  %v1061_v60 = vsel %vm147_vm2, %v1983_v63, 0.0  ;;  %v2099_v55 = vunpack.c.h.bf16 %v3856_v34 }
  0xb5   :  { %v3735_v16 = vadd.f32 %v918_v15, %v917_v30  ;;  %v3786_v15 = vld [vmem:[%s4160_s0 + $0x278] sm:$0xff]   ;;  %v2102_v59 = vunpack.c.l.bf16 %v3865_v33  ;;  %v1062_v8 = vadd.f32 %v1061_v60, %v1060_v3  ;;  %v1063_v23 = vsel %vm147_vm2, %v1986_v14, 0.0 }
  0xb6   :  { %v3814_v30 = vld [vmem:[%s4160_s0 + $0x2f8] sm:$0xff]   ;;  %v1065_v54 = vsel %vm147_vm2, %v1987_v25, 0.0  ;;  %v1067_v45 = vsel %vm147_vm2, %v1990_v49, 0.0  ;;  %v1069_v24 = vsel %vm147_vm2, %v1991_v36, 0.0  ;;  %v1081_v63 = vsel %vm147_vm2, %v1998_v48, 0.0 }
  0xb7   :  { %v1064_v3 = vadd.f32 %v1063_v23, %v1062_v8  ;;  %v1071_v14 = vsel %vm147_vm2, %v1994_v61, 0.0  ;;  %v1082_v51 = vsel %vm147_vm2, %v1999_v46, 0.0  ;;  %v1084_v25 = vsel %vm147_vm2, %v2002_v47, 0.0 }
  0xb8   :  { %v1073_v4 = vsel %vm147_vm2, %v1995_v27, 0.0  ;;  %v1083_v49 = vadd.f32 %v1082_v51, %v1081_v63  ;;  %v4269_v36 = vunpack.c.h.bf16 %v3684_v12  ;;  %v4270_v8 = vunpack.c.l.bf16 %v3692_v56 }
  0xb9   :  { %v1066_v32 = vadd.f32 %v1065_v54, %v1064_v3  ;;  %v4271_v46 = vunpack.c.h.bf16 %v3692_v56  ;;  %v4272_v47 = vunpack.c.l.bf16 %v3705_v57  ;;  %v4273_v27 = vunpack.c.h.bf16 %v3705_v57 }
  0xba   :  { %v1086_v48 = vsel %vm147_vm2, %v4269_v36, 0.0  ;;  %v1088_v61 = vsel %vm147_vm2, %v4270_v8, 0.0  ;;  %v1085_v12 = vadd.f32 %v1084_v25, %v1083_v49  ;;  %v4274_v63 = vunpack.c.l.bf16 %v3697_v22 }
  0xbb   :  { %v1090_v60 = vsel %vm147_vm2, %v4271_v46, 0.0  ;;  %v1102_v44 = vsel %vm147_vm2, %v4272_v47, 0.0  ;;  %v1103_v23 = vsel %vm147_vm2, %v4273_v27, 0.0  ;;  %v4275_v54 = vunpack.c.l.bf16 %v3710_v38 }
  0xbc   :  { %v1092_v51 = vsel %vm147_vm2, %v4274_v63, 0.0  ;;  %v1104_v36 = vadd.f32 %v1103_v23, %v1102_v44  ;;  %v1068_v3 = vadd.f32 %v1067_v45, %v1066_v32  ;;  %v4276_v8 = vunpack.c.h.bf16 %v3697_v22 }
  0xbd   :  { %v1105_v56 = vsel %vm147_vm2, %v4275_v54, 0.0  ;;  %v4277_v47 = vunpack.c.h.bf16 %v3710_v38  ;;  %v4278_v25 = vunpack.c.l.bf16 %v3719_v52  ;;  %v1087_v27 = vadd.f32 %v1086_v48, %v1085_v12 }
  0xbe   :  { %v1094_v46 = vsel %vm147_vm2, %v4276_v8, 0.0  ;;  %v1106_v63 = vadd.f32 %v1105_v56, %v1104_v36  ;;  %v4279_v44 = vunpack.c.h.bf16 %v3719_v52  ;;  %v4280_v45 = vunpack.c.l.bf16 %v3733_v6 }
  0xbf   :  { %v1107_v57 = vsel %vm147_vm2, %v4277_v47, 0.0  ;;  %v1109_v49 = vsel %vm147_vm2, %v4278_v25, 0.0  ;;  %v1070_v32 = vadd.f32 %v1069_v24, %v1068_v3  ;;  %v4281_v54 = vunpack.c.l.bf16 %v3728_v20 }
  0xc0   :  { %v1111_v23 = vsel %vm147_vm2, %v4279_v44, 0.0  ;;  %v1123_v22 = vsel %vm147_vm2, %v4280_v45, 0.0  ;;  %v4282_v8 = vunpack.c.h.bf16 %v3733_v6  ;;  %v4283_v48 = vunpack.c.l.bf16 %v3743_v40 }
  0xc1   :  { %v1113_v38 = vsel %vm147_vm2, %v4281_v54, 0.0  ;;  %v1089_v52 = vadd.f32 %v1088_v61, %v1087_v27  ;;  %v1108_v36 = vadd.f32 %v1107_v57, %v1106_v63  ;;  %v4284_v56 = vunpack.c.h.bf16 %v3728_v20 }
  0xc2   :  { %v1124_v47 = vsel %vm147_vm2, %v4282_v8, 0.0  ;;  %v1126_v12 = vsel %vm147_vm2, %v4283_v48, 0.0  ;;  %v1072_v24 = vadd.f32 %v1071_v14, %v1070_v32  ;;  %v4285_v3 = vunpack.c.h.bf16 %v3743_v40 }
  0xc3   :  { %v1115_v25 = vsel %vm147_vm2, %v4284_v56, 0.0  ;;  %v1125_v44 = vadd.f32 %v1124_v47, %v1123_v22  ;;  %v4286_v6 = vunpack.c.l.bf16 %v3748_v13  ;;  %v4287_v8 = vunpack.c.h.bf16 %v3748_v13 }
  0xc4   :  { %v1128_v45 = vsel %vm147_vm2, %v4285_v3, 0.0  ;;  %v1091_v61 = vadd.f32 %v1090_v60, %v1089_v52  ;;  %v1110_v57 = vadd.f32 %v1109_v49, %v1108_v36  ;;  %v4288_v20 = vunpack.c.l.bf16 %v3763_v39 }
  0xc5   :  { %v1130_v54 = vsel %vm147_vm2, %v4286_v6, 0.0  ;;  %v1132_v48 = vsel %vm147_vm2, %v4287_v8, 0.0  ;;  %v1127_v27 = vadd.f32 %v1126_v12, %v1125_v44  ;;  %v1074_v14 = vadd.f32 %v1073_v4, %v1072_v24 }
  0xc6   :  { %v1144_v63 = vsel %vm147_vm2, %v4288_v20, 0.0  ;;  %v4289_v40 = vunpack.c.l.bf16 %v3758_v31  ;;  %v4290_v32 = vunpack.c.h.bf16 %v3763_v39  ;;  %v4291_v13 = vunpack.c.l.bf16 %v3772_v28 }
  0xc7   :  { %v1093_v60 = vadd.f32 %v1092_v51, %v1091_v61  ;;  %v1112_v49 = vadd.f32 %v1111_v23, %v1110_v57  ;;  %v1129_v12 = vadd.f32 %v1128_v45, %v1127_v27  ;;  %v1075_v36 = vrot.slane %v1074_v14, 4 }
  0xc8   :  { %v1134_v22 = vsel %vm147_vm2, %v4289_v40, 0.0  ;;  %v1145_v47 = vsel %vm147_vm2, %v4290_v32, 0.0  ;;  %v1147_v56 = vsel %vm147_vm2, %v4291_v13, 0.0  ;;  %v4292_v44 = vunpack.c.h.bf16 %v3758_v31 }
  0xc9   :  { %v1146_v52 = vadd.f32 %v1145_v47, %v1144_v63  ;;  %v4293_v24 = vunpack.c.h.bf16 %v3772_v28  ;;  %v4294_v39 = vunpack.c.l.bf16 %v3777_v1  ;;  %v1095_v8 = vadd.f32 %v1094_v46, %v1093_v60 }
  0xca   :  { %v1136_v4 = vsel %vm147_vm2, %v4292_v44, 0.0  ;;  %v1114_v20 = vadd.f32 %v1113_v38, %v1112_v49  ;;  %v1131_v40 = vadd.f32 %v1130_v54, %v1129_v12  ;;  %v1076_v23 = vadd.f32 %v1075_v36, %v1074_v14 }
  0xcb   :  { %v1149_v3 = vsel %vm147_vm2, %v4293_v24, 0.0  ;;  %v1151_v6 = vsel %vm147_vm2, %v4294_v39, 0.0  ;;  %v1148_v51 = vadd.f32 %v1147_v56, %v1146_v52  ;;  %v4295_v45 = vunpack.c.h.bf16 %v3777_v1 }
  0xcc   :  { %v4296_v31 = vunpack.c.l.bf16 %v3791_v18  ;;  %v4297_v28 = vunpack.c.h.bf16 %v3791_v18  ;;  %v1096_v63 = vrot.slane %v1095_v8, 4  ;;  %v1116_v32 = vadd.f32 %v1115_v25, %v1114_v20 }
  0xcd   :  { %v1153_v61 = vsel %vm147_vm2, %v4295_v45, 0.0  ;;  %v1133_v47 = vadd.f32 %v1132_v48, %v1131_v40  ;;  %v1150_v46 = vadd.f32 %v1149_v3, %v1148_v51  ;;  %v1077_v38 = vrot.slane %v1076_v23, 2 }
  0xce   :  { %v1165_v57 = vsel %vm147_vm2, %v4296_v31, 0.0  ;;  %v1166_v27 = vsel %vm147_vm2, %v4297_v28, 0.0  ;;  %v4298_v14 = vunpack.c.l.bf16 %v3800_v43  ;;  %v4299_v13 = vunpack.c.h.bf16 %v3800_v43 }
  0xcf   :  { %v1167_v54 = vadd.f32 %v1166_v27, %v1165_v57  ;;  %v1097_v60 = vadd.f32 %v1096_v63, %v1095_v8  ;;  %v1117_v49 = vrot.slane %v1116_v32, 4  ;;  %v1135_v12 = vadd.f32 %v1134_v22, %v1133_v47 }
  0xd0   :  { %v1168_v1 = vsel %vm147_vm2, %v4298_v14, 0.0  ;;  %v1170_v56 = vsel %vm147_vm2, %v4299_v13, 0.0  ;;  %v1152_v18 = vadd.f32 %v1151_v6, %v1150_v46  ;;  %v1078_v52 = vadd.f32 %v1077_v38, %v1076_v23 }
  0xd1   :  { %v4300_v36 = vunpack.c.l.bf16 %v3786_v15  ;;  %v1169_v48 = vadd.f32 %v1168_v1, %v1167_v54  ;;  %v4301_v44 = vunpack.c.l.bf16 %v3805_v9  ;;  %v1098_v3 = vrot.slane %v1097_v60, 2 }
  0xd2   :  { %v1118_v39 = vadd.f32 %v1117_v49, %v1116_v32  ;;  %v1137_v20 = vadd.f32 %v1136_v4, %v1135_v12  ;;  %v1154_v43 = vadd.f32 %v1153_v61, %v1152_v18  ;;  %v2103_v40 = vunpack.c.h.bf16 %v3865_v33 }
  0xd3   :  { %v1155_v25 = vsel %vm147_vm2, %v4300_v36, 0.0  ;;  %v1172_v24 = vsel %vm147_vm2, %v4301_v44, 0.0  ;;  %v4302_v8 = vunpack.c.h.bf16 %v3786_v15  ;;  %v1171_v6 = vadd.f32 %v1170_v56, %v1169_v48 }
  0xd4   :  { %v4303_v51 = vunpack.c.h.bf16 %v3805_v9  ;;  %v1099_v45 = vadd.f32 %v1098_v3, %v1097_v60  ;;  %v1119_v31 = vrot.slane %v1118_v39, 2  ;;  %v1138_v57 = vrot.slane %v1137_v20, 4  ;;  %v4023_v9 = vld [vmem:[%s4160_s0 + $0x3f8] sm:$0xff]  }
  0xd5   :  { %v1157_v22 = vsel %vm147_vm2, %v4302_v8, 0.0  ;;  %v1156_v28 = vadd.f32 %v1155_v25, %v1154_v43  ;;  %v1079_v27 = vrot.slane %v1078_v52, 1  ;;  %v1173_v63 = vadd.f32 %v1172_v24, %v1171_v6 }
  0xd6   :  { %v1174_v23 = vsel %vm147_vm2, %v4303_v51, 0.0  ;;  %v4304_v4 = vunpack.c.l.bf16 %v3819_v42  ;;  %v4305_v32 = vunpack.c.h.bf16 %v3819_v42  ;;  %v1120_v47 = vadd.f32 %v1119_v31, %v1118_v39 }
  0xd7   :  { %v1139_v46 = vadd.f32 %v1138_v57, %v1137_v20  ;;  %v1158_v38 = vadd.f32 %v1157_v22, %v1156_v28  ;;  %v4306_v54 = vunpack.c.l.bf16 %v3814_v30  ;;  %v1100_v1 = vrot.slane %v1099_v45, 1 }
  0xd8   :  { %v1186_v61 = vsel %vm147_vm2, %v4304_v4, 0.0  ;;  %v1187_v15 = vsel %vm147_vm2, %v4305_v32, 0.0  ;;  %v1175_v13 = vadd.f32 %v1174_v23, %v1173_v63  ;;  %v4307_v60 = vunpack.c.l.bf16 %v3828_v58 }
  0xd9   :  { %v1176_v14 = vsel %vm147_vm2, %v4306_v54, 0.0  ;;  %v1188_v56 = vadd.f32 %v1187_v15, %v1186_v61  ;;  %v1140_v49 = vrot.slane %v1139_v46, 2  ;;  %v1159_v12 = vrot.slane %v1158_v38, 4 }
  0xda   :  { %v1189_v42 = vsel %vm147_vm2, %v4307_v60, 0.0  ;;  %v4308_v18 = vunpack.c.h.bf16 %v3814_v30  ;;  %v4309_v25 = vunpack.c.h.bf16 %v3828_v58  ;;  %v2106_v44 = vunpack.c.l.bf16 %v4023_v9 }
  0xdb   :  { %v1080_v24 = vadd.f32 %v1079_v27, %v1078_v52  ;;  %v1177_v3 = vadd.f32 %v1176_v14, %v1175_v13  ;;  %v1190_v39 = vadd.f32 %v1189_v42, %v1188_v56  ;;  %v1121_v20 = vrot.slane %v1120_v47, 1 }
  0xdc   :  { %v1178_v36 = vsel %vm147_vm2, %v4308_v18, 0.0  ;;  %v1191_v48 = vsel %vm147_vm2, %v4309_v25, 0.0  ;;  %v1141_v43 = vadd.f32 %v1140_v49, %v1139_v46  ;;  %v1160_v8 = vadd.f32 %v1159_v12, %v1158_v38 }
  0xdd   :  { %v4310_v22 = vunpack.c.l.bf16 %v3833_v17  ;;  %v1101_v51 = vadd.f32 %v1100_v1, %v1099_v45  ;;  %v1179_v30 = vadd.f32 %v1178_v36, %v1177_v3  ;;  %v1192_v23 = vadd.f32 %v1191_v48, %v1190_v39 }
  0xde   :  { %v1207_v58 = vsel %vm147_vm2, %v2094_v7, 0.0  ;;  %v1161_v31 = vrot.slane %v1160_v8, 2  ;;  %v4311_v57 = vunpack.c.h.bf16 %v3833_v17  ;;  %v1208_v28 = vsel %vm147_vm2, %v2095_v50, 0.0 }
  0xdf   :  { %v1193_v6 = vsel %vm147_vm2, %v4310_v22, 0.0  ;;  %v4312_v27 = vunpack.c.l.bf16 %v3856_v34  ;;  %v1142_v45 = vrot.slane %v1141_v43, 1  ;;  %v1180_v4 = vrot.slane %v1179_v30, 4 }
  0xe0   :  { %v1195_v52 = vsel %vm147_vm2, %v4311_v57, 0.0  ;;  %v1194_v61 = vadd.f32 %v1193_v6, %v1192_v23  ;;  %v1209_v32 = vadd.f32 %v1208_v28, %v1207_v58  ;;  %v1122_v15 = vadd.f32 %v1121_v20, %v1120_v47 }
  0xe1   :  { %v1210_v63 = vsel %vm147_vm2, %v4312_v27, 0.0  ;;  %v1162_v46 = vadd.f32 %v1161_v31, %v1160_v8  ;;  %v4313_v7 = vunpack.c.l.bf16 %v3842_v2  ;;  %v1212_v29 = vsel %vm147_vm2, %v2099_v55, 0.0 }
  0xe2   :  { %v1181_v38 = vadd.f32 %v1180_v4, %v1179_v30  ;;  %v1196_v50 = vadd.f32 %v1195_v52, %v1194_v61  ;;  %v4314_v54 = vunpack.c.h.bf16 %v3842_v2  ;;  %v1211_v1 = vadd.f32 %v1210_v63, %v1209_v32 }
  0xe3   :  { %v1197_v17 = vsel %vm147_vm2, %v4313_v7, 0.0  ;;  %v1163_v13 = vrot.slane %v1162_v46, 1  ;;  %v1214_v47 = vsel %vm147_vm2, %v2102_v59, 0.0  ;;  %v1228_v56 = vadd.f32 %v1080_v24, %v3649_v37 }
  0xe4   :  { %v1199_v14 = vsel %vm147_vm2, %v4314_v54, 0.0  ;;  %v1229_v60 = vadd.f32 %v1101_v51, %v3652_v0  ;;  %v1143_v42 = vadd.f32 %v1142_v45, %v1141_v43  ;;  %v1182_v34 = vrot.slane %v1181_v38, 2 }
  0xe5   :  { %v1198_v49 = vadd.f32 %v1197_v17, %v1196_v50  ;;  %v1213_v55 = vadd.f32 %v1212_v29, %v1211_v1  ;;  %v2107_v12 = vunpack.c.h.bf16 %v4023_v9  ;;  %v1216_v2 = vsel %vm147_vm2, %v2103_v40, 0.0 }
  0xe6   :  { %v1230_v18 = vadd.f32 %v1122_v15, %v3655_v5  ;;  %v1236_v36 = vpack.c.bf16 %v1228_v56, %v1228_v56  ;;  %v1183_v25 = vadd.f32 %v1182_v34, %v1181_v38  ;;  %v1237_v3 = vpack.c.bf16 %v1229_v60, %v1229_v60 }
  0xe7   :  { %v1200_v48 = vadd.f32 %v1199_v14, %v1198_v49  ;;  %v1215_v33 = vadd.f32 %v1214_v47, %v1213_v55  ;;  %v901_v59 = vrot.slane %v3750_v10, 1  ;;  %v929_v37 = vadd.f32 %v3712_v62, %v3633_v41 }
  0xe8   :  { %v1164_v0 = vadd.f32 %v1163_v13, %v1162_v46  ;;  %v1218_v24 = vsel %vm147_vm2, %v2106_v44, 0.0  ;;  %v1184_v39 = vrot.slane %v1183_v25, 1  ;;  %v1231_v40 = vadd.f32 %v1143_v42, %v3658_v26 }
  0xe9   :  { %v1201_v20 = vrot.slane %v1200_v48, 4  ;;  %v1217_v9 = vadd.f32 %v1216_v2, %v1215_v33  ;;  %v4315_v5 = vrot.slane %v3735_v16, 2  ;;  %v1220_v8 = vsel %vm147_vm2, %v2107_v12, 0.0 }
  0xea   :  { %v1238_v22 = vpack.c.bf16 %v1230_v18, %v1230_v18  ;;  %v1260_v6 = vunpack.c.l.b16 %v1236_v36  ;;  %v1185_v51 = vadd.f32 %v1184_v39, %v1183_v25  ;;  %v1261_v41 = vunpack.c.l.b16 %v1237_v3  ;;  %v2304_v3 = vld [vmem:[%s4163_s3 + $0x38] sm:$0xff]   ;;  %v2309_v39 = vld [vmem:[%s4163_s3 + $0x68] sm:$0xff]  }
  0xeb   :  { %v921_v43 = vadd.f32 %v4315_v5, %v3735_v16  ;;  %v1202_v30 = vadd.f32 %v1201_v20, %v1200_v48  ;;  %v1219_v23 = vadd.f32 %v1218_v24, %v1217_v9  ;;  %v4316_v62 = vrot.slane %v3184_v35, 1  ;;  %2262 = vmatpush3.bf16.msra.mxu1 %v2304_v3  ;;  %v2308_v24 = vld [vmem:[%s4163_s3 + $0x28] sm:$0xff]   ;;  %v1562_v20 = vld [vmem:[%s4162_s2] ss:$0 sm:$0xff] }
  0xec   :  { %v626_v58 = vadd.f32 %v3629_v19, %v3201_v21  ;;  %v1232_v26 = vadd.f32 %v1164_v0, %v3676_v53  ;;  %vm1268_vm3 = vcmask 1041409   ;;  %v902_v16 = vadd.f32 %v901_v59, %v3750_v10  ;;  %v2305_v59 = vld [vmem:[%s4163_s3 + $0x78] sm:$0xff]   ;;  %v2307_v0 = vld [vmem:[%s4163_s3 + $0x70] sm:$0xff]  }
  0xed   :  { %v315_v44 = vadd.f32 %v4316_v62, %v3184_v35  ;;  %v1203_v31 = vrot.slane %v1202_v30, 2  ;;  %v1221_v57 = vadd.f32 %v1220_v8, %v1219_v23  ;;  %v1239_v52 = vpack.c.bf16 %v1231_v40, %v1231_v40  ;;  %v2313_v23 = vld [vmem:[%s4163_s3 + $0x58] sm:$0xff]   ;;  %v2315_v62 = vld [vmem:[%s4163_s3 + $0x50] sm:$0xff]  }
  0xee   :  { %v4317_v28 = vrot.slane %v3387_v11, 1  ;;  %v922_v63 = vrot.slane %v921_v43, 1  ;;  %v1262_v45 = vunpack.c.l.b16 %v1238_v22  ;;  %vm1270_vm4 = vcmask 1042434  }
  0xef   :  { %v1204_v4 = vadd.f32 %v1203_v31, %v1202_v30  ;;  %v1222_v35 = vrot.slane %v1221_v57, 4  ;;  %v1233_v61 = vadd.f32 %v1185_v51, %v929_v37  ;;  %v1269_v32 = vsel %vm1268_vm3, %v1261_v41, %v1260_v6  ;;  %v2306_v37 = vld [vmem:[%s4163_s3 + $0x30] sm:$0xff]   ;;  %v2310_v6 = vld [vmem:[%s4163_s3 + $0x20] sm:$0xff]   ;;  %v2312_v30 = vld [vmem:[%s4163_s3 + $0x18] sm:$0xff]  }
  0xf0   :  { %v619_v27 = vadd.f32 %v4317_v28, %v3387_v11  ;;  %v1240_v21 = vpack.c.bf16 %v1232_v26, %v1232_v26  ;;  %v930_v19 = vadd.f32 %v902_v16, %v626_v58  ;;  %v1263_v46 = vunpack.c.l.b16 %v1239_v52  ;;  %v2311_v51 = vld [vmem:[%s4163_s3 + $0x60] sm:$0xff]   ;;  %v2314_v41 = vld [vmem:[%s4163_s3 + $0x10] sm:$0xff]   ;;  %v2317_v58 = vld [vmem:[%s4163_s3 + $0x48] sm:$0xff]  }
  0xf1   :  { %v1205_v53 = vrot.slane %v1204_v4, 1  ;;  %v1223_v15 = vadd.f32 %v1222_v35, %v1221_v57  ;;  %v1271_v7 = vsel %vm1270_vm4, %v1262_v45, %v1269_v32  ;;  %vm1272_vm5 = vcmask 1043459   ;;  %v2318_v26 = vld [vmem:[%s4163_s3] sm:$0xff]  }
  0xf2   :  { %v627_v10 = vadd.f32 %v619_v27, %v315_v44  ;;  %v923_v17 = vadd.f32 %v922_v63, %v921_v43  ;;  %v1241_v50 = vpack.c.bf16 %v1233_v61, %v1233_v61  ;;  %v1264_v11 = vunpack.c.l.b16 %v1240_v21  ;;  %v2316_v44 = vld [vmem:[%s4163_s3 + $0x8] sm:$0xff]   ;;  %v2319_v16 = vld [vmem:[%s4163_s3 + $0x40] sm:$0xff]   ;;  %s2322_s3 = scalar_lea.vmem %s1555_s8, 128 }
  0xf3   :  { %v1206_v29 = vadd.f32 %v1205_v53, %v1204_v4  ;;  %v1224_v38 = vrot.slane %v1223_v15, 2  ;;  %v1273_v1 = vsel %vm1272_vm5, %v1263_v46, %v1271_v7  ;;  %vm1274_vm6 = vcmask 1044484   ;;  %p2323_p0 = scmp.ne.s32.totalorder %s1555_s8, %s2322_s3  ;;  %p2328_p2 = scmp.lt.s32.totalorder %s2322_s3, %s2322_s3 }
  0xf4   :  { %v931_v13 = vadd.f32 %v923_v17, %v627_v10  ;;  %v1265_v60 = vunpack.c.l.b16 %v1241_v50  ;;  %v1275_v42 = vsel %vm1274_vm6, %v1264_v11, %v1273_v1  ;;  %vm1276_vm7 = vcmask 1045509  }
  0xf5   :  { %v1225_v54 = vadd.f32 %v1224_v38, %v1223_v15  ;;  %v1234_v14 = vadd.f32 %v1206_v29, %v930_v19  ;;  %vm1278_vm8 = vcmask 1046534   ;;  %vm1280_vm9 = vcmask 1047559   ;;  %p2329_p3 = por %p2328_p2, %p2327_p1 }
  0xf6   :  { %v1277_v12 = vsel %vm1276_vm7, %v1265_v60, %v1275_v42  ;;  %v4318_v33 = vmov 0.0  }
  0xf7   :  { %v1226_v47 = vrot.slane %v1225_v54, 1  ;;  %v1242_v56 = vpack.c.bf16 %v1234_v14, %v1234_v14  ;;  %2263 = vmatprep.subr.bf16.mxu1 %v4318_v33  ;;  %p2330_p4 = pnand %p2329_p3, %p2323_p0 }
  0xf8   :  { %2264 = vmatpush3.bf16.msra.mxu1 %v2306_v37 }
  0xf9   :  { %v1227_v34 = vadd.f32 %v1226_v47, %v1225_v54  ;;  %v1266_v49 = vunpack.c.l.b16 %v1242_v56  ;;  %2265 = vmatprep.subr.bf16.mxu1 %v4318_v33 }
  0xfb   :  { %v1235_v55 = vadd.f32 %v1227_v34, %v931_v13  ;;  %v1279_v18 = vsel %vm1278_vm8, %v1266_v49, %v1277_v12 }
  0xfc   :  { %2266 = vmatpush3.bf16.msra.mxu1 %v2308_v24 }
  0xfd   :  { %v1243_v2 = vpack.c.bf16 %v1235_v55, %v1235_v55  ;;  %2267 = vmatprep.subr.bf16.mxu1 %v4318_v33 }
  0xff   :  { %v1267_v36 = vunpack.c.l.b16 %v1243_v2 }
 0x100   :  { %2268 = vmatpush3.bf16.msra.mxu1 %v2310_v6 }
 0x101   :  { %v1281_v25 = vsel %vm1280_vm9, %v1267_v36, %v1279_v18  ;;  %2269 = vmatprep.subr.bf16.mxu1 %v4318_v33 }
 0x102   :  { %v1282_v48 = vpack.c.b16 %v1281_v25, %v1281_v25 }
 0x104   :  { %2258 = vmatmul.mubr.msk.bf16.vlgmr.msra.gmra.mxu0 %vm147_vm2, %v1282_v48  ;;  %2270 = vmatpush3.bf16.msra.mxu1 %v2312_v30 }
 0x105   :  { %2297 = vmatprep.mubr.msk.bf16.mxu0 %vm2345_vm1, %v4318_v33  ;;  %2282 = vmatpush3.bf16.msra.mxu0 %v2305_v59 }
 0x106   :  { %2283 = vmatprep.subr.bf16.mxu0 %v4318_v33  ;;  %2271 = vmatprep.subr.bf16.mxu1 %v4318_v33 }
 0x108   :  { %2272 = vmatpush3.bf16.msra.mxu1 %v2314_v41 }
 0x109   :  { %2284 = vmatpush3.bf16.msra.mxu0 %v2307_v0  ;;  %2273 = vmatprep.subr.bf16.mxu1 %v4318_v33 }
 0x10a   :  { %2285 = vmatprep.subr.bf16.mxu0 %v4318_v33 }
 0x10c   :  { %2274 = vmatpush3.bf16.msra.mxu1 %v2316_v44 }
 0x10d   :  { %2286 = vmatpush3.bf16.msra.mxu0 %v2309_v39  ;;  %2275 = vmatprep.subr.bf16.mxu1 %v4318_v33 }
 0x10e   :  { %2287 = vmatprep.subr.bf16.mxu0 %v4318_v33 }
 0x110   :  { %2276 = vmatpush3.bf16.msra.mxu1 %v2318_v26 }
 0x111   :  { %2288 = vmatpush3.bf16.msra.mxu0 %v2311_v51 }
 0x112   :  { %2289 = vmatprep.subr.bf16.mxu0 %v4318_v33 }
 0x115   :  { %2290 = vmatpush3.bf16.msra.mxu0 %v2313_v23 }
 0x116   :  { %2291 = vmatprep.subr.bf16.mxu0 %v4318_v33 }
 0x119   :  { %2292 = vmatpush3.bf16.msra.mxu0 %v2315_v62 }
 0x11a   :  { %2293 = vmatprep.subr.bf16.mxu0 %v4318_v33 }
 0x11d   :  { %2294 = vmatpush3.bf16.msra.mxu0 %v2317_v58 }
 0x11e   :  { %2295 = vmatprep.subr.bf16.mxu0 %v4318_v33 }
 0x121   :  { %2296 = vmatpush3.bf16.msra.mxu0 %v2319_v16 }
 0x1c4   :  { %v1324_v9 = vpop.f32.mrf.mxu0 }
 0x1c5   :  { %v1325_v40 = vadd.f32 %v1562_v20, %v1324_v9 }
 0x1c6   :  { %v2259_v5 = vpop.f32.mrf.mxu0 }
 0x1c7   :  { %v1330_v43 = vmul.f32 %v1325_v40, %v1325_v40 }
 0x1c8   :  { %v1327_v8 = vpop.f32.mrf.mxu0 }
 0x1c9   :  { %1331 = vadd.xlane.f32.xlu0 %v1330_v43 }
 0x1ca   :  { %v2260_v22 = vpop.f32.mrf.mxu0 }
 0x252   :  { %v1332_v31 = vpop.xlane.xlu0 %1331 }
 0x253   :  { %v1333_v57 = vmax.f32 %v1332_v31, 1e-24 }
 0x255   :  { %2320 = vrsqrt.f32 %v1333_v57 }
 0x262   :  { %v2321_v52 = vpop.eup %2320 }
 0x263   :  { %v1335_v28 = vmul.f32 %v2321_v52, %v1325_v40 }
 0x265   :  { %v1336_v27 = vpack.c.bf16 %v1335_v28, %v1335_v28 }
 0x267   :  { %2278 = vmatmul.mubr.bf16.vlgmr.msra.gmra.mxu1 %v1336_v27  ;;  %2298 = vmatmul.mubr.bf16.vlgmr.msra.gmra.mxu0 %v1336_v27 }
 0x327   :  { %v1435_v63 = vpop.f32.mrf.mxu1  ;;  %v1540_v45 = vpop.f32.mrf.mxu0 }
 0x328   :  { %v1546_v4 = vmax.f32 %v1435_v63, %v1540_v45 }
 0x329   :  { %v2279_v35 = vpop.f32.mrf.mxu1  ;;  %v2299_v61 = vpop.f32.mrf.mxu0 }
 0x32a   :  { %1547 = vst [vmem:[#allocation2] sm:$0xff] %v1546_v4 }
 0x32b   :  { %v1438_v32 = vpop.f32.mrf.mxu1  ;;  %v1543_v21 = vpop.f32.mrf.mxu0 }
 0x32c   :  { %2333 = shalt.err (!%p2330_p4)
}
 0x32d   :  { %1557 = dma.vmem_to_hbm [thread:$0]  %s1555_s8, 128, %s4164_s4, [#allocation3]   ;;  %v2280_v19 = vpop.f32.mrf.mxu1  ;;  %v2300_v53 = vpop.f32.mrf.mxu0 }
 0x32e   :  { %2342 = dma.done.wait [#allocation3], 128  }
 0x32f   :  { %2343 = vsyncadd [#allocation3], 4294967168 }
 0x330   :  { %1561 = vsyncpa [#allocation3], 1 }

</bundles_post_ra>
